<compile_context>
chip_gen: v6e
topology: v6e:2x2x1
jax: 0.10.0
libtpu: 0.0.40
codegen_flags: <defaults>
</compile_context>

<pallas_src>
import jax
import jax.numpy as jnp
from jax import lax
from jax.experimental import pallas as pl
from jax.experimental.pallas import tpu as pltpu

# ---------------- problem sizes (small, consistent with the module) ----------
B = 2              # logical batch
BP = 8             # batch rows padded to the 8-sublane tile
T = 8              # sequence length
VOCAB = 50         # len(vocab.itos)
VP = 64            # vocab padded for the in-kernel one-hot matmul
E = 32             # embedding_size
H = 32             # hidden_dim per direction (8H = 256 gate lanes, both dirs)
L = 8              # vocab.n_labels == crf.num_tags
PAD_IDX = 0

F32 = jnp.float32
BF16 = jnp.bfloat16


# ------------------------------ fused kernel ----------------------------------
def lstm_crf_kernel(words_ref, tags_ref, gtab_ref, whh_ref, wpf_ref, wpb_ref,
                    bproj_ref, trans_ref, start_ref, end_ref,
                    dirsel_ref, actscale_ref, actoff_ref, loss_ref):
    TB = T * BP
    H2 = 2 * H

    # ---- embedding + input-to-hidden transform + bias: one one-hot matmul over
    #      the pre-fused per-token gate table (no gather, no zero-padded W_ih) --
    words = words_ref[...]                                             # (TB,1) i32
    onehot = (lax.broadcasted_iota(jnp.int32, (TB, VP), 1) == words).astype(BF16)
    G = jnp.dot(onehot, gtab_ref[...], preferred_element_type=F32)     # (TB, 8H)
    maskf = (words != PAD_IDX).astype(F32)                             # (TB, 1)

    dirsel = dirsel_ref[...]          # (1,8H): 1.0 on fwd-direction lanes
    ascale = actscale_ref[...]        # (1,8H): 0.5 on sigmoid lanes, 1.0 on g
    aoff = actoff_ref[...]            # (1,8H): 0.5 on sigmoid lanes, 0.0 on g
    whh = whh_ref[...]                # (2H,8H) bf16, block-diagonal per direction

    # ---- fused bidirectional LSTM recurrence (fully unrolled, T = 8) ----
    h = jnp.zeros((BP, H2), F32)      # [h_fwd | h_bwd]
    c = jnp.zeros((BP, H2), F32)
    hs = []
    for t in range(T):
        ts = t * BP                   # forward direction consumes time t
        rs = (T - 1 - t) * BP         # backward direction consumes time T-1-t
        g_b = G[rs:rs + BP, :]
        gin = g_b + (G[ts:ts + BP, :] - g_b) * dirsel                  # (BP, 8H)
        gates = jnp.dot(h.astype(BF16), whh,
                        preferred_element_type=F32) + gin              # (BP, 8H)
        # one tanh pass over the whole slab: sigmoid(x) = 0.5*tanh(x/2) + 0.5
        act = jnp.tanh(gates * ascale) * ascale + aoff
        i_g = act[:, 0 * H2:1 * H2]
        f_g = act[:, 1 * H2:2 * H2]
        g_g = act[:, 2 * H2:3 * H2]
        o_g = act[:, 3 * H2:4 * H2]
        c = f_g * c + i_g * g_g
        h = o_g * jnp.tanh(c)
        hs.append(h)

    # ---- rnn_to_crf projection (dropout = eval-mode identity) ----
    # TODO(synk): training-mode dropout mask (nn.Dropout) not modeled.
    # hcat block t = [h_f(t) | h_b(T-1-t)]; hrev block t = [h_f(T-1-t) | h_b(t)]
    hcat = jnp.concatenate(hs, axis=0).astype(BF16)                    # (TB, 2H)
    hrev = jnp.concatenate(hs[::-1], axis=0).astype(BF16)              # (TB, 2H)
    feats = (jnp.dot(hcat, wpf_ref[...], preferred_element_type=F32)
             + jnp.dot(hrev, wpb_ref[...], preferred_element_type=F32)
             + bproj_ref[...])                                         # (TB, L)

    trans = trans_ref[...]                                             # (L, L)
    start = start_ref[...]                                             # (1, L)
    end = end_ref[...]                                                 # (1, L)

    # ---- CRF log-partition (allennlp _input_likelihood), f32 throughout ----
    t_max = jnp.max(trans, axis=0, keepdims=True)                      # (1, L)
    exp_trans = jnp.exp(trans - t_max)                                 # col-normalized
    alpha = start + feats[0:BP, :]                                     # (BP, L)
    for t in range(1, T):
        ts = t * BP
        m = jnp.max(alpha, axis=-1, keepdims=True)
        summed = jnp.dot(jnp.exp(alpha - m), exp_trans,
                         preferred_element_type=F32)                   # (BP, L)
        new_alpha = jnp.log(summed) + m + t_max + feats[ts:ts + BP, :]
        mk = maskf[ts:ts + BP, :]
        alpha = new_alpha * mk + alpha * (1.0 - mk)
    stops = alpha + end
    m = jnp.max(stops, axis=-1, keepdims=True)
    log_z = jnp.log(jnp.sum(jnp.exp(stops - m), axis=-1, keepdims=True)) + m  # (BP,1)

    # ---- CRF gold-path score (allennlp _joint_likelihood), batched over time --
    # NOTE: like allennlp, assumes the mask is a contiguous (right-padded) prefix.
    oh_all = (lax.broadcasted_iota(jnp.int32, (TB, L), 1)
              == tags_ref[...]).astype(F32)                            # (TB, L)
    emit_all = jnp.sum(feats * oh_all, axis=-1, keepdims=True)         # (TB, 1)
    NB = (T - 1) * BP
    trans_sc = jnp.sum(jnp.dot(oh_all[0:NB, :], trans,
                               preferred_element_type=F32)
                       * oh_all[BP:TB, :], axis=-1, keepdims=True)     # (NB, 1)

    score = jnp.sum(oh_all[0:BP, :] * start, axis=-1, keepdims=True)   # start[tags[0]]
    last_oh = jnp.zeros((BP, L), F32)
    for t in range(T):
        ts = t * BP
        mk_t = maskf[ts:ts + BP, :]
        if t < T - 1:
            mk_n = maskf[ts + BP:ts + 2 * BP, :]
            score = (score + trans_sc[ts:ts + BP, :] * mk_n
                     + emit_all[ts:ts + BP, :] * mk_t)
        else:
            mk_n = jnp.zeros((BP, 1), F32)
        # one-hot of the tag at each row's last unmasked position
        last_oh = last_oh + oh_all[ts:ts + BP, :] * (mk_t - mk_n)
    ls = (T - 1) * BP
    score = (score + jnp.sum(last_oh * end, axis=-1, keepdims=True)
             + jnp.sum(feats[ls:ls + BP, :] * last_oh, axis=-1, keepdims=True)
             * maskf[ls:ls + BP, :])

    # ---- negative log-likelihood over REAL rows (padded rows masked out) ----
    valid = maskf[0:BP, :]            # real sequences have an unmasked first token
    loss_ref[...] = -jnp.sum((score - log_z) * valid, axis=0, keepdims=True)  # (1,1)


def _vmem():
    return pl.BlockSpec(memory_space=pltpu.MemorySpace.VMEM)


def lstm_crf_forward(kparams, words, labs):
    """Fused forward pass. words, labs: (B, T) int32. Returns scalar loss."""
    # Time-major layout with the row (batch) dim padded to the 8-sublane tile.
    wt = jnp.pad(jnp.transpose(words).astype(jnp.int32),
                 ((0, 0), (0, BP - B)), constant_values=PAD_IDX)       # (T, BP)
    lt = jnp.pad(jnp.transpose(labs).astype(jnp.int32),
                 ((0, 0), (0, BP - B)), constant_values=0)             # (T, BP)
    words2 = wt.reshape(T * BP, 1)
    tags2 = lt.reshape(T * BP, 1)
    loss = pl.pallas_call(
        lstm_crf_kernel,
        out_shape=jax.ShapeDtypeStruct((1, 1), jnp.float32),
        in_specs=[_vmem()] * 13,
        out_specs=_vmem(),
    )(words2, tags2, kparams["gate_table"], kparams["w_hh"],
      kparams["w_proj_f"], kparams["w_proj_b"], kparams["b_proj"],
      kparams["transitions"], kparams["start_row"], kparams["end_row"],
      kparams["dirsel"], kparams["actscale"], kparams["actoff"])
    return loss[0, 0]


# ------------------------------ parameters ------------------------------------
def init_params(key):
    """PyTorch-layout parameters (nn.Embedding / nn.LSTM / nn.Linear / CRF)."""
    ks = jax.random.split(key, 16)
    s = 1.0 / jnp.sqrt(jnp.float32(H))

    def u(k, shape):
        return jax.random.uniform(k, shape, jnp.float32, minval=-s, maxval=s)

    emb = jax.random.normal(ks[0], (VOCAB, E), jnp.float32) * 0.1
    emb = emb.at[PAD_IDX].set(0.0)                 # padding_idx row is zero

    p = {"embedding": emb}
    # nn.LSTM bidirectional: weight_ih (4H, E), weight_hh (4H, H), gates [i f g o]
    p["w_ih_f"] = u(ks[1], (4 * H, E))
    p["w_hh_f"] = u(ks[2], (4 * H, H))
    p["b_ih_f"] = u(ks[3], (4 * H,))
    p["b_hh_f"] = u(ks[4], (4 * H,))
    p["w_ih_b"] = u(ks[5], (4 * H, E))
    p["w_hh_b"] = u(ks[6], (4 * H, H))
    p["b_ih_b"] = u(ks[7], (4 * H,))
    p["b_hh_b"] = u(ks[8], (4 * H,))
    # rnn_to_crf: nn.Linear(2H, L)
    p["w_proj"] = u(ks[9], (L, 2 * H))
    p["b_proj"] = u(ks[10], (L,))
    # allennlp CRF
    p["transitions"] = jax.random.normal(ks[11], (L, L), jnp.float32) * 0.1
    p["start_trans"] = jax.random.normal(ks[12], (L,), jnp.float32) * 0.1
    p["end_trans"] = jax.random.normal(ks[13], (L,), jnp.float32) * 0.1
    return p


def prepare_kernel_params(p):
    """Repack PyTorch-layout params into the fused-kernel layout (done once)."""

    def interleave_gates(a, b):
        # a, b: (..., 4H) with gate blocks [i f g o]; returns (..., 8H) laid out
        # gate-major / direction-inner: [i_a i_b f_a f_b g_a g_b o_a o_b].
        blocks = []
        for k in range(4):
            blocks.append(a[..., k * H:(k + 1) * H])
            blocks.append(b[..., k * H:(k + 1) * H])
        return jnp.concatenate(blocks, axis=-1)

    # Dense input transform (E, 8H) carrying BOTH directions (no zero padding).
    w_ih = interleave_gates(p["w_ih_f"].T, p["w_ih_b"].T)               # (E, 8H)
    bias = interleave_gates((p["b_ih_f"] + p["b_hh_f"])[None, :],
                            (p["b_ih_b"] + p["b_hh_b"])[None, :])       # (1, 8H)
    # Fold embedding lookup + input transform + bias into one per-token table.
    emb = jnp.zeros((VP, E), jnp.float32).at[:VOCAB, :].set(p["embedding"])
    gate_table = (emb @ w_ih + bias).astype(BF16)                       # (VP, 8H)

    # Block-diagonal recurrent weights (2H, 8H): rows [h_fwd | h_bwd].
    zH = jnp.zeros((H, 4 * H), jnp.float32)
    w_hh = jnp.concatenate([interleave_gates(p["w_hh_f"].T, zH),
                            interleave_gates(zH, p["w_hh_b"].T)],
                           axis=0).astype(BF16)                         # (2H, 8H)

    # Projection, direction-separated and zero-padded to (2H, L) so the two
    # post-loop matmuls need no lane slicing of the stacked hidden states.
    wp = p["w_proj"]                                                    # (L, 2H)
    w_proj_f = jnp.concatenate([wp[:, :H].T, jnp.zeros((H, L), jnp.float32)],
                               axis=0).astype(BF16)                     # (2H, L)
    w_proj_b = jnp.concatenate([jnp.zeros((H, L), jnp.float32), wp[:, H:].T],
                               axis=0).astype(BF16)                     # (2H, L)

    # Constant per-lane vectors for direction routing and the fused activation.
    lane = jnp.arange(8 * H)
    in_block = lane % (2 * H)
    dirsel = (in_block < H).astype(jnp.float32).reshape(1, 8 * H)
    is_g = (lane // (2 * H)) == 2
    actscale = jnp.where(is_g, 1.0, 0.5).astype(jnp.float32).reshape(1, 8 * H)
    actoff = jnp.where(is_g, 0.0, 0.5).astype(jnp.float32).reshape(1, 8 * H)

    return {
        "gate_table": gate_table,
        "w_hh": w_hh,
        "w_proj_f": w_proj_f,
        "w_proj_b": w_proj_b,
        "b_proj": p["b_proj"].reshape(1, L).astype(jnp.float32),
        "transitions": p["transitions"],
        "start_row": p["start_trans"].reshape(1, L),
        "end_row": p["end_trans"].reshape(1, L),
        "dirsel": dirsel,
        "actscale": actscale,
        "actoff": actoff,
    }


# --------------------- pure-JAX reference (correctness check) -----------------
def forward_reference(p, words, labs):
    maskf = (words != PAD_IDX).astype(jnp.float32)           # (B, T)
    emb = p["embedding"][words]                              # (B, T, E)
    x_tbe = jnp.transpose(emb, (1, 0, 2))                    # (T, B, E)

    def run_dir(xs, w_ih, w_hh, b_ih, b_hh):
        h = jnp.zeros((B, H), jnp.float32)
        c = jnp.zeros((B, H), jnp.float32)
        hs = []
        for t in range(T):
            g = xs[t] @ w_ih.T + h @ w_hh.T + b_ih + b_hh
            i = jax.nn.sigmoid(g[:, 0:H])
            f = jax.nn.sigmoid(g[:, H:2 * H])
            gg = jnp.tanh(g[:, 2 * H:3 * H])
            o = jax.nn.sigmoid(g[:, 3 * H:4 * H])
            c = f * c + i * gg
            h = o * jnp.tanh(c)
            hs.append(h)
        return jnp.stack(hs)                                 # (T, B, H)

    hf = run_dir(x_tbe, p["w_ih_f"], p["w_hh_f"], p["b_ih_f"], p["b_hh_f"])
    hb = jnp.flip(run_dir(jnp.flip(x_tbe, 0), p["w_ih_b"], p["w_hh_b"],
                          p["b_ih_b"], p["b_hh_b"]), 0)
    out = jnp.concatenate([hf, hb], axis=-1)                 # (T, B, 2H)
    feats = out @ p["w_proj"].T + p["b_proj"]                # (T, B, L)
    maskf_tb = maskf.T                                       # (T, B)

    alpha = p["start_trans"][None, :] + feats[0]
    for t in range(1, T):
        inner = (alpha[:, :, None] + p["transitions"][None, :, :]
                 + feats[t][:, None, :])
        new_alpha = jax.scipy.special.logsumexp(inner, axis=1)
        mk = maskf_tb[t][:, None]
        alpha = new_alpha * mk + alpha * (1.0 - mk)
    log_z = jax.scipy.special.logsumexp(alpha + p["end_trans"][None, :], axis=-1)

    tags = labs.T                                            # (T, B)
    bar = jnp.arange(B)
    score = p["start_trans"][tags[0]]
    for i in range(T - 1):
        cur, nxt = tags[i], tags[i + 1]
        score = (score + p["transitions"][cur, nxt] * maskf_tb[i + 1]
                 + feats[i, bar, cur] * maskf_tb[i])
    last_idx = maskf_tb.sum(0).astype(jnp.int32) - 1
    last_tags = tags[last_idx, bar]
    score = (score + p["end_trans"][last_tags]
             + feats[T - 1, bar, last_tags] * maskf_tb[T - 1])
    return -jnp.sum(score - log_z)


# ------------------------------------ main -------------------------------------
if __name__ == "__main__":
    key = jax.random.PRNGKey(0)
    k_p, k_w, k_l = jax.random.split(key, 3)
    params = init_params(k_p)
    kparams = prepare_kernel_params(params)

    # words: (B, T) int32 token ids, pad_idx = 0; right-padded tails.
    words = jax.random.randint(k_w, (B, T), 1, VOCAB, dtype=jnp.int32)
    words = words.at[0, 6:].set(PAD_IDX)
    words = words.at[1, 5:].set(PAD_IDX)
    # labs: (B, T) int32 tag ids in [0, L)
    labs = jax.random.randint(k_l, (B, T), 0, L, dtype=jnp.int32)

    loss = jax.jit(lstm_crf_forward)(kparams, words, labs)
    loss = jax.block_until_ready(loss)
    assert jnp.isfinite(loss), "non-finite loss"

    # Correctness check against an independent pure-JAX implementation.
    with jax.default_matmul_precision("float32"):
        ref = forward_reference(params, words, labs)
    assert jnp.allclose(loss, ref, rtol=2e-2, atol=2e-2), (float(loss), float(ref))

    print("KERNEL_OK")
</pallas_src>

<mosaic_0001>
module attributes {stable_mosaic.version = 11 : i64} {
  func.func @lstm_crf_kernel(%arg0: memref<64x1xi32, #tpu.memory_space<vmem>>, %arg1: memref<64x1xi32, #tpu.memory_space<vmem>>, %arg2: memref<64x256xbf16, #tpu.memory_space<vmem>>, %arg3: memref<64x256xbf16, #tpu.memory_space<vmem>>, %arg4: memref<64x8xbf16, #tpu.memory_space<vmem>>, %arg5: memref<64x8xbf16, #tpu.memory_space<vmem>>, %arg6: memref<1x8xf32, #tpu.memory_space<vmem>>, %arg7: memref<8x8xf32, #tpu.memory_space<vmem>>, %arg8: memref<1x8xf32, #tpu.memory_space<vmem>>, %arg9: memref<1x8xf32, #tpu.memory_space<vmem>>, %arg10: memref<1x256xf32, #tpu.memory_space<vmem>>, %arg11: memref<1x256xf32, #tpu.memory_space<vmem>>, %arg12: memref<1x256xf32, #tpu.memory_space<vmem>>, %arg13: memref<1x1xf32, #tpu.memory_space<vmem>>) attributes {dimension_semantics = [], scalar_prefetch = 0 : i64, scratch_operands = 0 : i64, tpu.core_type = #tpu.core_type<tc>} {
    %c0 = arith.constant 0 : index
    %c0_0 = arith.constant 0 : index
    %0 = vector.load %arg0[%c0, %c0_0] : memref<64x1xi32, #tpu.memory_space<vmem>>, vector<64x1xi32>
    %1 = tpu.iota {dimensions = array<i32: 1>} : vector<64x64xi32>
    %2 = vector.broadcast %0 : vector<64x1xi32> to vector<64x64xi32>
    %3 = arith.cmpi eq, %1, %2 : vector<64x64xi32>
    %4 = arith.extui %3 : vector<64x64xi1> to vector<64x64xi32>
    %5 = arith.sitofp %4 : vector<64x64xi32> to vector<64x64xf32>
    %6 = arith.truncf %5 : vector<64x64xf32> to vector<64x64xbf16>
    %c0_1 = arith.constant 0 : index
    %c0_2 = arith.constant 0 : index
    %7 = vector.load %arg2[%c0_1, %c0_2] : memref<64x256xbf16, #tpu.memory_space<vmem>>, vector<64x256xbf16>
    %cst = arith.constant dense<0.000000e+00> : vector<64x256xf32>
    %8 = tpu.matmul %6, %7, %cst {dimension_numbers = #tpu.dot_dimension_numbers<[1], [0], [0], [1], [0, 0, 1, 1], [], []>} : vector<64x64xbf16>, vector<64x256xbf16>, vector<64x256xf32> -> vector<64x256xf32>
    %c0_i32 = arith.constant 0 : i32
    %9 = vector.broadcast %c0_i32 : i32 to vector<64x1xi32>
    %10 = arith.cmpi ne, %0, %9 : vector<64x1xi32>
    %11 = arith.extui %10 : vector<64x1xi1> to vector<64x1xi32>
    %12 = arith.sitofp %11 : vector<64x1xi32> to vector<64x1xf32>
    %c0_3 = arith.constant 0 : index
    %c0_4 = arith.constant 0 : index
    %13 = vector.load %arg10[%c0_3, %c0_4] : memref<1x256xf32, #tpu.memory_space<vmem>>, vector<1x256xf32>
    %c0_5 = arith.constant 0 : index
    %c0_6 = arith.constant 0 : index
    %14 = vector.load %arg11[%c0_5, %c0_6] : memref<1x256xf32, #tpu.memory_space<vmem>>, vector<1x256xf32>
    %c0_7 = arith.constant 0 : index
    %c0_8 = arith.constant 0 : index
    %15 = vector.load %arg12[%c0_7, %c0_8] : memref<1x256xf32, #tpu.memory_space<vmem>>, vector<1x256xf32>
    %c0_9 = arith.constant 0 : index
    %c0_10 = arith.constant 0 : index
    %16 = vector.load %arg3[%c0_9, %c0_10] : memref<64x256xbf16, #tpu.memory_space<vmem>>, vector<64x256xbf16>
    %cst_11 = arith.constant 0.000000e+00 : f32
    %17 = vector.broadcast %cst_11 : f32 to vector<8x64xf32>
    %cst_12 = arith.constant 0.000000e+00 : f32
    %18 = vector.broadcast %cst_12 : f32 to vector<8x64xf32>
    %19 = vector.extract_strided_slice %8 {offsets = [56, 0], sizes = [8, 256], strides = [1, 1]} : vector<64x256xf32> to vector<8x256xf32>
    %20 = vector.extract_strided_slice %8 {offsets = [0, 0], sizes = [8, 256], strides = [1, 1]} : vector<64x256xf32> to vector<8x256xf32>
    %21 = arith.subf %20, %19 : vector<8x256xf32>
    %22 = vector.broadcast %13 : vector<1x256xf32> to vector<8x256xf32>
    %23 = arith.mulf %21, %22 : vector<8x256xf32>
    %24 = arith.addf %19, %23 : vector<8x256xf32>
    %25 = arith.truncf %17 : vector<8x64xf32> to vector<8x64xbf16>
    %cst_13 = arith.constant dense<0.000000e+00> : vector<8x256xf32>
    %26 = tpu.matmul %25, %16, %cst_13 {dimension_numbers = #tpu.dot_dimension_numbers<[1], [0], [0], [1], [0, 0, 1, 1], [], []>} : vector<8x64xbf16>, vector<64x256xbf16>, vector<8x256xf32> -> vector<8x256xf32>
    %27 = arith.addf %26, %24 : vector<8x256xf32>
    %28 = vector.broadcast %14 : vector<1x256xf32> to vector<8x256xf32>
    %29 = arith.mulf %27, %28 : vector<8x256xf32>
    %30 = math.tanh %29 : vector<8x256xf32>
    %31 = vector.broadcast %14 : vector<1x256xf32> to vector<8x256xf32>
    %32 = arith.mulf %30, %31 : vector<8x256xf32>
    %33 = vector.broadcast %15 : vector<1x256xf32> to vector<8x256xf32>
    %34 = arith.addf %32, %33 : vector<8x256xf32>
    %35 = vector.extract_strided_slice %34 {offsets = [0, 0], sizes = [8, 64], strides = [1, 1]} : vector<8x256xf32> to vector<8x64xf32>
    %36 = vector.extract_strided_slice %34 {offsets = [0, 64], sizes = [8, 64], strides = [1, 1]} : vector<8x256xf32> to vector<8x64xf32>
    %37 = vector.extract_strided_slice %34 {offsets = [0, 128], sizes = [8, 64], strides = [1, 1]} : vector<8x256xf32> to vector<8x64xf32>
    %38 = vector.extract_strided_slice %34 {offsets = [0, 192], sizes = [8, 64], strides = [1, 1]} : vector<8x256xf32> to vector<8x64xf32>
    %39 = arith.mulf %36, %18 : vector<8x64xf32>
    %40 = arith.mulf %35, %37 : vector<8x64xf32>
    %41 = arith.addf %39, %40 : vector<8x64xf32>
    %42 = math.tanh %41 : vector<8x64xf32>
    %43 = arith.mulf %38, %42 : vector<8x64xf32>
    %44 = vector.extract_strided_slice %8 {offsets = [48, 0], sizes = [8, 256], strides = [1, 1]} : vector<64x256xf32> to vector<8x256xf32>
    %45 = vector.extract_strided_slice %8 {offsets = [8, 0], sizes = [8, 256], strides = [1, 1]} : vector<64x256xf32> to vector<8x256xf32>
    %46 = arith.subf %45, %44 : vector<8x256xf32>
    %47 = vector.broadcast %13 : vector<1x256xf32> to vector<8x256xf32>
    %48 = arith.mulf %46, %47 : vector<8x256xf32>
    %49 = arith.addf %44, %48 : vector<8x256xf32>
    %50 = arith.truncf %43 : vector<8x64xf32> to vector<8x64xbf16>
    %cst_14 = arith.constant dense<0.000000e+00> : vector<8x256xf32>
    %51 = tpu.matmul %50, %16, %cst_14 {dimension_numbers = #tpu.dot_dimension_numbers<[1], [0], [0], [1], [0, 0, 1, 1], [], []>} : vector<8x64xbf16>, vector<64x256xbf16>, vector<8x256xf32> -> vector<8x256xf32>
    %52 = arith.addf %51, %49 : vector<8x256xf32>
    %53 = vector.broadcast %14 : vector<1x256xf32> to vector<8x256xf32>
    %54 = arith.mulf %52, %53 : vector<8x256xf32>
    %55 = math.tanh %54 : vector<8x256xf32>
    %56 = vector.broadcast %14 : vector<1x256xf32> to vector<8x256xf32>
    %57 = arith.mulf %55, %56 : vector<8x256xf32>
    %58 = vector.broadcast %15 : vector<1x256xf32> to vector<8x256xf32>
    %59 = arith.addf %57, %58 : vector<8x256xf32>
    %60 = vector.extract_strided_slice %59 {offsets = [0, 0], sizes = [8, 64], strides = [1, 1]} : vector<8x256xf32> to vector<8x64xf32>
    %61 = vector.extract_strided_slice %59 {offsets = [0, 64], sizes = [8, 64], strides = [1, 1]} : vector<8x256xf32> to vector<8x64xf32>
    %62 = vector.extract_strided_slice %59 {offsets = [0, 128], sizes = [8, 64], strides = [1, 1]} : vector<8x256xf32> to vector<8x64xf32>
    %63 = vector.extract_strided_slice %59 {offsets = [0, 192], sizes = [8, 64], strides = [1, 1]} : vector<8x256xf32> to vector<8x64xf32>
    %64 = arith.mulf %61, %41 : vector<8x64xf32>
    %65 = arith.mulf %60, %62 : vector<8x64xf32>
    %66 = arith.addf %64, %65 : vector<8x64xf32>
    %67 = math.tanh %66 : vector<8x64xf32>
    %68 = arith.mulf %63, %67 : vector<8x64xf32>
    %69 = vector.extract_strided_slice %8 {offsets = [40, 0], sizes = [8, 256], strides = [1, 1]} : vector<64x256xf32> to vector<8x256xf32>
    %70 = vector.extract_strided_slice %8 {offsets = [16, 0], sizes = [8, 256], strides = [1, 1]} : vector<64x256xf32> to vector<8x256xf32>
    %71 = arith.subf %70, %69 : vector<8x256xf32>
    %72 = vector.broadcast %13 : vector<1x256xf32> to vector<8x256xf32>
    %73 = arith.mulf %71, %72 : vector<8x256xf32>
    %74 = arith.addf %69, %73 : vector<8x256xf32>
    %75 = arith.truncf %68 : vector<8x64xf32> to vector<8x64xbf16>
    %cst_15 = arith.constant dense<0.000000e+00> : vector<8x256xf32>
    %76 = tpu.matmul %75, %16, %cst_15 {dimension_numbers = #tpu.dot_dimension_numbers<[1], [0], [0], [1], [0, 0, 1, 1], [], []>} : vector<8x64xbf16>, vector<64x256xbf16>, vector<8x256xf32> -> vector<8x256xf32>
    %77 = arith.addf %76, %74 : vector<8x256xf32>
    %78 = vector.broadcast %14 : vector<1x256xf32> to vector<8x256xf32>
    %79 = arith.mulf %77, %78 : vector<8x256xf32>
    %80 = math.tanh %79 : vector<8x256xf32>
    %81 = vector.broadcast %14 : vector<1x256xf32> to vector<8x256xf32>
    %82 = arith.mulf %80, %81 : vector<8x256xf32>
    %83 = vector.broadcast %15 : vector<1x256xf32> to vector<8x256xf32>
    %84 = arith.addf %82, %83 : vector<8x256xf32>
    %85 = vector.extract_strided_slice %84 {offsets = [0, 0], sizes = [8, 64], strides = [1, 1]} : vector<8x256xf32> to vector<8x64xf32>
    %86 = vector.extract_strided_slice %84 {offsets = [0, 64], sizes = [8, 64], strides = [1, 1]} : vector<8x256xf32> to vector<8x64xf32>
    %87 = vector.extract_strided_slice %84 {offsets = [0, 128], sizes = [8, 64], strides = [1, 1]} : vector<8x256xf32> to vector<8x64xf32>
    %88 = vector.extract_strided_slice %84 {offsets = [0, 192], sizes = [8, 64], strides = [1, 1]} : vector<8x256xf32> to vector<8x64xf32>
    %89 = arith.mulf %86, %66 : vector<8x64xf32>
    %90 = arith.mulf %85, %87 : vector<8x64xf32>
    %91 = arith.addf %89, %90 : vector<8x64xf32>
    %92 = math.tanh %91 : vector<8x64xf32>
    %93 = arith.mulf %88, %92 : vector<8x64xf32>
    %94 = vector.extract_strided_slice %8 {offsets = [32, 0], sizes = [8, 256], strides = [1, 1]} : vector<64x256xf32> to vector<8x256xf32>
    %95 = vector.extract_strided_slice %8 {offsets = [24, 0], sizes = [8, 256], strides = [1, 1]} : vector<64x256xf32> to vector<8x256xf32>
    %96 = arith.subf %95, %94 : vector<8x256xf32>
    %97 = vector.broadcast %13 : vector<1x256xf32> to vector<8x256xf32>
    %98 = arith.mulf %96, %97 : vector<8x256xf32>
    %99 = arith.addf %94, %98 : vector<8x256xf32>
    %100 = arith.truncf %93 : vector<8x64xf32> to vector<8x64xbf16>
    %cst_16 = arith.constant dense<0.000000e+00> : vector<8x256xf32>
    %101 = tpu.matmul %100, %16, %cst_16 {dimension_numbers = #tpu.dot_dimension_numbers<[1], [0], [0], [1], [0, 0, 1, 1], [], []>} : vector<8x64xbf16>, vector<64x256xbf16>, vector<8x256xf32> -> vector<8x256xf32>
    %102 = arith.addf %101, %99 : vector<8x256xf32>
    %103 = vector.broadcast %14 : vector<1x256xf32> to vector<8x256xf32>
    %104 = arith.mulf %102, %103 : vector<8x256xf32>
    %105 = math.tanh %104 : vector<8x256xf32>
    %106 = vector.broadcast %14 : vector<1x256xf32> to vector<8x256xf32>
    %107 = arith.mulf %105, %106 : vector<8x256xf32>
    %108 = vector.broadcast %15 : vector<1x256xf32> to vector<8x256xf32>
    %109 = arith.addf %107, %108 : vector<8x256xf32>
    %110 = vector.extract_strided_slice %109 {offsets = [0, 0], sizes = [8, 64], strides = [1, 1]} : vector<8x256xf32> to vector<8x64xf32>
    %111 = vector.extract_strided_slice %109 {offsets = [0, 64], sizes = [8, 64], strides = [1, 1]} : vector<8x256xf32> to vector<8x64xf32>
    %112 = vector.extract_strided_slice %109 {offsets = [0, 128], sizes = [8, 64], strides = [1, 1]} : vector<8x256xf32> to vector<8x64xf32>
    %113 = vector.extract_strided_slice %109 {offsets = [0, 192], sizes = [8, 64], strides = [1, 1]} : vector<8x256xf32> to vector<8x64xf32>
    %114 = arith.mulf %111, %91 : vector<8x64xf32>
    %115 = arith.mulf %110, %112 : vector<8x64xf32>
    %116 = arith.addf %114, %115 : vector<8x64xf32>
    %117 = math.tanh %116 : vector<8x64xf32>
    %118 = arith.mulf %113, %117 : vector<8x64xf32>
    %119 = vector.extract_strided_slice %8 {offsets = [24, 0], sizes = [8, 256], strides = [1, 1]} : vector<64x256xf32> to vector<8x256xf32>
    %120 = vector.extract_strided_slice %8 {offsets = [32, 0], sizes = [8, 256], strides = [1, 1]} : vector<64x256xf32> to vector<8x256xf32>
    %121 = arith.subf %120, %119 : vector<8x256xf32>
    %122 = vector.broadcast %13 : vector<1x256xf32> to vector<8x256xf32>
    %123 = arith.mulf %121, %122 : vector<8x256xf32>
    %124 = arith.addf %119, %123 : vector<8x256xf32>
    %125 = arith.truncf %118 : vector<8x64xf32> to vector<8x64xbf16>
    %cst_17 = arith.constant dense<0.000000e+00> : vector<8x256xf32>
    %126 = tpu.matmul %125, %16, %cst_17 {dimension_numbers = #tpu.dot_dimension_numbers<[1], [0], [0], [1], [0, 0, 1, 1], [], []>} : vector<8x64xbf16>, vector<64x256xbf16>, vector<8x256xf32> -> vector<8x256xf32>
    %127 = arith.addf %126, %124 : vector<8x256xf32>
    %128 = vector.broadcast %14 : vector<1x256xf32> to vector<8x256xf32>
    %129 = arith.mulf %127, %128 : vector<8x256xf32>
    %130 = math.tanh %129 : vector<8x256xf32>
    %131 = vector.broadcast %14 : vector<1x256xf32> to vector<8x256xf32>
    %132 = arith.mulf %130, %131 : vector<8x256xf32>
    %133 = vector.broadcast %15 : vector<1x256xf32> to vector<8x256xf32>
    %134 = arith.addf %132, %133 : vector<8x256xf32>
    %135 = vector.extract_strided_slice %134 {offsets = [0, 0], sizes = [8, 64], strides = [1, 1]} : vector<8x256xf32> to vector<8x64xf32>
    %136 = vector.extract_strided_slice %134 {offsets = [0, 64], sizes = [8, 64], strides = [1, 1]} : vector<8x256xf32> to vector<8x64xf32>
    %137 = vector.extract_strided_slice %134 {offsets = [0, 128], sizes = [8, 64], strides = [1, 1]} : vector<8x256xf32> to vector<8x64xf32>
    %138 = vector.extract_strided_slice %134 {offsets = [0, 192], sizes = [8, 64], strides = [1, 1]} : vector<8x256xf32> to vector<8x64xf32>
    %139 = arith.mulf %136, %116 : vector<8x64xf32>
    %140 = arith.mulf %135, %137 : vector<8x64xf32>
    %141 = arith.addf %139, %140 : vector<8x64xf32>
    %142 = math.tanh %141 : vector<8x64xf32>
    %143 = arith.mulf %138, %142 : vector<8x64xf32>
    %144 = vector.extract_strided_slice %8 {offsets = [16, 0], sizes = [8, 256], strides = [1, 1]} : vector<64x256xf32> to vector<8x256xf32>
    %145 = vector.extract_strided_slice %8 {offsets = [40, 0], sizes = [8, 256], strides = [1, 1]} : vector<64x256xf32> to vector<8x256xf32>
    %146 = arith.subf %145, %144 : vector<8x256xf32>
    %147 = vector.broadcast %13 : vector<1x256xf32> to vector<8x256xf32>
    %148 = arith.mulf %146, %147 : vector<8x256xf32>
    %149 = arith.addf %144, %148 : vector<8x256xf32>
    %150 = arith.truncf %143 : vector<8x64xf32> to vector<8x64xbf16>
    %cst_18 = arith.constant dense<0.000000e+00> : vector<8x256xf32>
    %151 = tpu.matmul %150, %16, %cst_18 {dimension_numbers = #tpu.dot_dimension_numbers<[1], [0], [0], [1], [0, 0, 1, 1], [], []>} : vector<8x64xbf16>, vector<64x256xbf16>, vector<8x256xf32> -> vector<8x256xf32>
    %152 = arith.addf %151, %149 : vector<8x256xf32>
    %153 = vector.broadcast %14 : vector<1x256xf32> to vector<8x256xf32>
    %154 = arith.mulf %152, %153 : vector<8x256xf32>
    %155 = math.tanh %154 : vector<8x256xf32>
    %156 = vector.broadcast %14 : vector<1x256xf32> to vector<8x256xf32>
    %157 = arith.mulf %155, %156 : vector<8x256xf32>
    %158 = vector.broadcast %15 : vector<1x256xf32> to vector<8x256xf32>
    %159 = arith.addf %157, %158 : vector<8x256xf32>
    %160 = vector.extract_strided_slice %159 {offsets = [0, 0], sizes = [8, 64], strides = [1, 1]} : vector<8x256xf32> to vector<8x64xf32>
    %161 = vector.extract_strided_slice %159 {offsets = [0, 64], sizes = [8, 64], strides = [1, 1]} : vector<8x256xf32> to vector<8x64xf32>
    %162 = vector.extract_strided_slice %159 {offsets = [0, 128], sizes = [8, 64], strides = [1, 1]} : vector<8x256xf32> to vector<8x64xf32>
    %163 = vector.extract_strided_slice %159 {offsets = [0, 192], sizes = [8, 64], strides = [1, 1]} : vector<8x256xf32> to vector<8x64xf32>
    %164 = arith.mulf %161, %141 : vector<8x64xf32>
    %165 = arith.mulf %160, %162 : vector<8x64xf32>
    %166 = arith.addf %164, %165 : vector<8x64xf32>
    %167 = math.tanh %166 : vector<8x64xf32>
    %168 = arith.mulf %163, %167 : vector<8x64xf32>
    %169 = vector.extract_strided_slice %8 {offsets = [8, 0], sizes = [8, 256], strides = [1, 1]} : vector<64x256xf32> to vector<8x256xf32>
    %170 = vector.extract_strided_slice %8 {offsets = [48, 0], sizes = [8, 256], strides = [1, 1]} : vector<64x256xf32> to vector<8x256xf32>
    %171 = arith.subf %170, %169 : vector<8x256xf32>
    %172 = vector.broadcast %13 : vector<1x256xf32> to vector<8x256xf32>
    %173 = arith.mulf %171, %172 : vector<8x256xf32>
    %174 = arith.addf %169, %173 : vector<8x256xf32>
    %175 = arith.truncf %168 : vector<8x64xf32> to vector<8x64xbf16>
    %cst_19 = arith.constant dense<0.000000e+00> : vector<8x256xf32>
    %176 = tpu.matmul %175, %16, %cst_19 {dimension_numbers = #tpu.dot_dimension_numbers<[1], [0], [0], [1], [0, 0, 1, 1], [], []>} : vector<8x64xbf16>, vector<64x256xbf16>, vector<8x256xf32> -> vector<8x256xf32>
    %177 = arith.addf %176, %174 : vector<8x256xf32>
    %178 = vector.broadcast %14 : vector<1x256xf32> to vector<8x256xf32>
    %179 = arith.mulf %177, %178 : vector<8x256xf32>
    %180 = math.tanh %179 : vector<8x256xf32>
    %181 = vector.broadcast %14 : vector<1x256xf32> to vector<8x256xf32>
    %182 = arith.mulf %180, %181 : vector<8x256xf32>
    %183 = vector.broadcast %15 : vector<1x256xf32> to vector<8x256xf32>
    %184 = arith.addf %182, %183 : vector<8x256xf32>
    %185 = vector.extract_strided_slice %184 {offsets = [0, 0], sizes = [8, 64], strides = [1, 1]} : vector<8x256xf32> to vector<8x64xf32>
    %186 = vector.extract_strided_slice %184 {offsets = [0, 64], sizes = [8, 64], strides = [1, 1]} : vector<8x256xf32> to vector<8x64xf32>
    %187 = vector.extract_strided_slice %184 {offsets = [0, 128], sizes = [8, 64], strides = [1, 1]} : vector<8x256xf32> to vector<8x64xf32>
    %188 = vector.extract_strided_slice %184 {offsets = [0, 192], sizes = [8, 64], strides = [1, 1]} : vector<8x256xf32> to vector<8x64xf32>
    %189 = arith.mulf %186, %166 : vector<8x64xf32>
    %190 = arith.mulf %185, %187 : vector<8x64xf32>
    %191 = arith.addf %189, %190 : vector<8x64xf32>
    %192 = math.tanh %191 : vector<8x64xf32>
    %193 = arith.mulf %188, %192 : vector<8x64xf32>
    %194 = vector.extract_strided_slice %8 {offsets = [0, 0], sizes = [8, 256], strides = [1, 1]} : vector<64x256xf32> to vector<8x256xf32>
    %195 = vector.extract_strided_slice %8 {offsets = [56, 0], sizes = [8, 256], strides = [1, 1]} : vector<64x256xf32> to vector<8x256xf32>
    %196 = arith.subf %195, %194 : vector<8x256xf32>
    %197 = vector.broadcast %13 : vector<1x256xf32> to vector<8x256xf32>
    %198 = arith.mulf %196, %197 : vector<8x256xf32>
    %199 = arith.addf %194, %198 : vector<8x256xf32>
    %200 = arith.truncf %193 : vector<8x64xf32> to vector<8x64xbf16>
    %cst_20 = arith.constant dense<0.000000e+00> : vector<8x256xf32>
    %201 = tpu.matmul %200, %16, %cst_20 {dimension_numbers = #tpu.dot_dimension_numbers<[1], [0], [0], [1], [0, 0, 1, 1], [], []>} : vector<8x64xbf16>, vector<64x256xbf16>, vector<8x256xf32> -> vector<8x256xf32>
    %202 = arith.addf %201, %199 : vector<8x256xf32>
    %203 = vector.broadcast %14 : vector<1x256xf32> to vector<8x256xf32>
    %204 = arith.mulf %202, %203 : vector<8x256xf32>
    %205 = math.tanh %204 : vector<8x256xf32>
    %206 = vector.broadcast %14 : vector<1x256xf32> to vector<8x256xf32>
    %207 = arith.mulf %205, %206 : vector<8x256xf32>
    %208 = vector.broadcast %15 : vector<1x256xf32> to vector<8x256xf32>
    %209 = arith.addf %207, %208 : vector<8x256xf32>
    %210 = vector.extract_strided_slice %209 {offsets = [0, 0], sizes = [8, 64], strides = [1, 1]} : vector<8x256xf32> to vector<8x64xf32>
    %211 = vector.extract_strided_slice %209 {offsets = [0, 64], sizes = [8, 64], strides = [1, 1]} : vector<8x256xf32> to vector<8x64xf32>
    %212 = vector.extract_strided_slice %209 {offsets = [0, 128], sizes = [8, 64], strides = [1, 1]} : vector<8x256xf32> to vector<8x64xf32>
    %213 = vector.extract_strided_slice %209 {offsets = [0, 192], sizes = [8, 64], strides = [1, 1]} : vector<8x256xf32> to vector<8x64xf32>
    %214 = arith.mulf %211, %191 : vector<8x64xf32>
    %215 = arith.mulf %210, %212 : vector<8x64xf32>
    %216 = arith.addf %214, %215 : vector<8x64xf32>
    %217 = math.tanh %216 : vector<8x64xf32>
    %218 = arith.mulf %213, %217 : vector<8x64xf32>
    %219 = tpu.concatenate %43, %68, %93, %118, %143, %168, %193, %218 in 0 : vector<8x64xf32>, vector<8x64xf32>, vector<8x64xf32>, vector<8x64xf32>, vector<8x64xf32>, vector<8x64xf32>, vector<8x64xf32>, vector<8x64xf32> -> vector<64x64xf32>
    %220 = arith.truncf %219 : vector<64x64xf32> to vector<64x64xbf16>
    %221 = tpu.concatenate %218, %193, %168, %143, %118, %93, %68, %43 in 0 : vector<8x64xf32>, vector<8x64xf32>, vector<8x64xf32>, vector<8x64xf32>, vector<8x64xf32>, vector<8x64xf32>, vector<8x64xf32>, vector<8x64xf32> -> vector<64x64xf32>
    %222 = arith.truncf %221 : vector<64x64xf32> to vector<64x64xbf16>
    %c0_21 = arith.constant 0 : index
    %c0_22 = arith.constant 0 : index
    %223 = vector.load %arg4[%c0_21, %c0_22] : memref<64x8xbf16, #tpu.memory_space<vmem>>, vector<64x8xbf16>
    %cst_23 = arith.constant dense<0.000000e+00> : vector<64x8xf32>
    %224 = tpu.matmul %220, %223, %cst_23 {dimension_numbers = #tpu.dot_dimension_numbers<[1], [0], [0], [1], [0, 0, 1, 1], [], []>} : vector<64x64xbf16>, vector<64x8xbf16>, vector<64x8xf32> -> vector<64x8xf32>
    %c0_24 = arith.constant 0 : index
    %c0_25 = arith.constant 0 : index
    %225 = vector.load %arg5[%c0_24, %c0_25] : memref<64x8xbf16, #tpu.memory_space<vmem>>, vector<64x8xbf16>
    %cst_26 = arith.constant dense<0.000000e+00> : vector<64x8xf32>
    %226 = tpu.matmul %222, %225, %cst_26 {dimension_numbers = #tpu.dot_dimension_numbers<[1], [0], [0], [1], [0, 0, 1, 1], [], []>} : vector<64x64xbf16>, vector<64x8xbf16>, vector<64x8xf32> -> vector<64x8xf32>
    %227 = arith.addf %224, %226 : vector<64x8xf32>
    %c0_27 = arith.constant 0 : index
    %c0_28 = arith.constant 0 : index
    %228 = vector.load %arg6[%c0_27, %c0_28] : memref<1x8xf32, #tpu.memory_space<vmem>>, vector<1x8xf32>
    %229 = vector.broadcast %228 : vector<1x8xf32> to vector<64x8xf32>
    %230 = arith.addf %227, %229 : vector<64x8xf32>
    %c0_29 = arith.constant 0 : index
    %c0_30 = arith.constant 0 : index
    %231 = vector.load %arg7[%c0_29, %c0_30] : memref<8x8xf32, #tpu.memory_space<vmem>>, vector<8x8xf32>
    %c0_31 = arith.constant 0 : index
    %c0_32 = arith.constant 0 : index
    %232 = vector.load %arg8[%c0_31, %c0_32] : memref<1x8xf32, #tpu.memory_space<vmem>>, vector<1x8xf32>
    %c0_33 = arith.constant 0 : index
    %c0_34 = arith.constant 0 : index
    %233 = vector.load %arg9[%c0_33, %c0_34] : memref<1x8xf32, #tpu.memory_space<vmem>>, vector<1x8xf32>
    %cst_35 = arith.constant dense<0xFF800000> : vector<8xf32>
    %234 = vector.multi_reduction <maximumf>, %231, %cst_35 [0] : vector<8x8xf32> to vector<8xf32>
    %235 = vector.shape_cast %234 : vector<8xf32> to vector<1x8xf32>
    %236 = vector.broadcast %235 : vector<1x8xf32> to vector<8x8xf32>
    %237 = arith.subf %231, %236 : vector<8x8xf32>
    %238 = math.exp %237 : vector<8x8xf32>
    %239 = vector.extract_strided_slice %230 {offsets = [0, 0], sizes = [8, 8], strides = [1, 1]} : vector<64x8xf32> to vector<8x8xf32>
    %240 = vector.broadcast %232 : vector<1x8xf32> to vector<8x8xf32>
    %241 = arith.addf %240, %239 : vector<8x8xf32>
    %cst_36 = arith.constant dense<0xFF800000> : vector<8xf32>
    %242 = vector.multi_reduction <maximumf>, %241, %cst_36 [1] : vector<8x8xf32> to vector<8xf32>
    %243 = vector.shape_cast %242 : vector<8xf32> to vector<8x1xf32>
    %244 = vector.broadcast %243 : vector<8x1xf32> to vector<8x8xf32>
    %245 = arith.subf %241, %244 : vector<8x8xf32>
    %246 = math.exp %245 : vector<8x8xf32>
    %cst_37 = arith.constant dense<0.000000e+00> : vector<8x8xf32>
    %247 = tpu.matmul %246, %238, %cst_37 {dimension_numbers = #tpu.dot_dimension_numbers<[1], [0], [0], [1], [0, 0, 1, 1], [], []>} : vector<8x8xf32>, vector<8x8xf32>, vector<8x8xf32> -> vector<8x8xf32>
    %248 = math.log %247 : vector<8x8xf32>
    %249 = vector.broadcast %243 : vector<8x1xf32> to vector<8x8xf32>
    %250 = arith.addf %248, %249 : vector<8x8xf32>
    %251 = vector.broadcast %235 : vector<1x8xf32> to vector<8x8xf32>
    %252 = arith.addf %250, %251 : vector<8x8xf32>
    %253 = vector.extract_strided_slice %230 {offsets = [8, 0], sizes = [8, 8], strides = [1, 1]} : vector<64x8xf32> to vector<8x8xf32>
    %254 = arith.addf %252, %253 : vector<8x8xf32>
    %255 = vector.extract_strided_slice %12 {offsets = [8, 0], sizes = [8, 1], strides = [1, 1]} : vector<64x1xf32> to vector<8x1xf32>
    %256 = vector.broadcast %255 : vector<8x1xf32> to vector<8x8xf32>
    %257 = arith.mulf %254, %256 : vector<8x8xf32>
    %cst_38 = arith.constant 1.000000e+00 : f32
    %258 = vector.broadcast %cst_38 : f32 to vector<8x1xf32>
    %259 = arith.subf %258, %255 : vector<8x1xf32>
    %260 = vector.broadcast %259 : vector<8x1xf32> to vector<8x8xf32>
    %261 = arith.mulf %241, %260 : vector<8x8xf32>
    %262 = arith.addf %257, %261 : vector<8x8xf32>
    %cst_39 = arith.constant dense<0xFF800000> : vector<8xf32>
    %263 = vector.multi_reduction <maximumf>, %262, %cst_39 [1] : vector<8x8xf32> to vector<8xf32>
    %264 = vector.shape_cast %263 : vector<8xf32> to vector<8x1xf32>
    %265 = vector.broadcast %264 : vector<8x1xf32> to vector<8x8xf32>
    %266 = arith.subf %262, %265 : vector<8x8xf32>
    %267 = math.exp %266 : vector<8x8xf32>
    %cst_40 = arith.constant dense<0.000000e+00> : vector<8x8xf32>
    %268 = tpu.matmul %267, %238, %cst_40 {dimension_numbers = #tpu.dot_dimension_numbers<[1], [0], [0], [1], [0, 0, 1, 1], [], []>} : vector<8x8xf32>, vector<8x8xf32>, vector<8x8xf32> -> vector<8x8xf32>
    %269 = math.log %268 : vector<8x8xf32>
    %270 = vector.broadcast %264 : vector<8x1xf32> to vector<8x8xf32>
    %271 = arith.addf %269, %270 : vector<8x8xf32>
    %272 = vector.broadcast %235 : vector<1x8xf32> to vector<8x8xf32>
    %273 = arith.addf %271, %272 : vector<8x8xf32>
    %274 = vector.extract_strided_slice %230 {offsets = [16, 0], sizes = [8, 8], strides = [1, 1]} : vector<64x8xf32> to vector<8x8xf32>
    %275 = arith.addf %273, %274 : vector<8x8xf32>
    %276 = vector.extract_strided_slice %12 {offsets = [16, 0], sizes = [8, 1], strides = [1, 1]} : vector<64x1xf32> to vector<8x1xf32>
    %277 = vector.broadcast %276 : vector<8x1xf32> to vector<8x8xf32>
    %278 = arith.mulf %275, %277 : vector<8x8xf32>
    %cst_41 = arith.constant 1.000000e+00 : f32
    %279 = vector.broadcast %cst_41 : f32 to vector<8x1xf32>
    %280 = arith.subf %279, %276 : vector<8x1xf32>
    %281 = vector.broadcast %280 : vector<8x1xf32> to vector<8x8xf32>
    %282 = arith.mulf %262, %281 : vector<8x8xf32>
    %283 = arith.addf %278, %282 : vector<8x8xf32>
    %cst_42 = arith.constant dense<0xFF800000> : vector<8xf32>
    %284 = vector.multi_reduction <maximumf>, %283, %cst_42 [1] : vector<8x8xf32> to vector<8xf32>
    %285 = vector.shape_cast %284 : vector<8xf32> to vector<8x1xf32>
    %286 = vector.broadcast %285 : vector<8x1xf32> to vector<8x8xf32>
    %287 = arith.subf %283, %286 : vector<8x8xf32>
    %288 = math.exp %287 : vector<8x8xf32>
    %cst_43 = arith.constant dense<0.000000e+00> : vector<8x8xf32>
    %289 = tpu.matmul %288, %238, %cst_43 {dimension_numbers = #tpu.dot_dimension_numbers<[1], [0], [0], [1], [0, 0, 1, 1], [], []>} : vector<8x8xf32>, vector<8x8xf32>, vector<8x8xf32> -> vector<8x8xf32>
    %290 = math.log %289 : vector<8x8xf32>
    %291 = vector.broadcast %285 : vector<8x1xf32> to vector<8x8xf32>
    %292 = arith.addf %290, %291 : vector<8x8xf32>
    %293 = vector.broadcast %235 : vector<1x8xf32> to vector<8x8xf32>
    %294 = arith.addf %292, %293 : vector<8x8xf32>
    %295 = vector.extract_strided_slice %230 {offsets = [24, 0], sizes = [8, 8], strides = [1, 1]} : vector<64x8xf32> to vector<8x8xf32>
    %296 = arith.addf %294, %295 : vector<8x8xf32>
    %297 = vector.extract_strided_slice %12 {offsets = [24, 0], sizes = [8, 1], strides = [1, 1]} : vector<64x1xf32> to vector<8x1xf32>
    %298 = vector.broadcast %297 : vector<8x1xf32> to vector<8x8xf32>
    %299 = arith.mulf %296, %298 : vector<8x8xf32>
    %cst_44 = arith.constant 1.000000e+00 : f32
    %300 = vector.broadcast %cst_44 : f32 to vector<8x1xf32>
    %301 = arith.subf %300, %297 : vector<8x1xf32>
    %302 = vector.broadcast %301 : vector<8x1xf32> to vector<8x8xf32>
    %303 = arith.mulf %283, %302 : vector<8x8xf32>
    %304 = arith.addf %299, %303 : vector<8x8xf32>
    %cst_45 = arith.constant dense<0xFF800000> : vector<8xf32>
    %305 = vector.multi_reduction <maximumf>, %304, %cst_45 [1] : vector<8x8xf32> to vector<8xf32>
    %306 = vector.shape_cast %305 : vector<8xf32> to vector<8x1xf32>
    %307 = vector.broadcast %306 : vector<8x1xf32> to vector<8x8xf32>
    %308 = arith.subf %304, %307 : vector<8x8xf32>
    %309 = math.exp %308 : vector<8x8xf32>
    %cst_46 = arith.constant dense<0.000000e+00> : vector<8x8xf32>
    %310 = tpu.matmul %309, %238, %cst_46 {dimension_numbers = #tpu.dot_dimension_numbers<[1], [0], [0], [1], [0, 0, 1, 1], [], []>} : vector<8x8xf32>, vector<8x8xf32>, vector<8x8xf32> -> vector<8x8xf32>
    %311 = math.log %310 : vector<8x8xf32>
    %312 = vector.broadcast %306 : vector<8x1xf32> to vector<8x8xf32>
    %313 = arith.addf %311, %312 : vector<8x8xf32>
    %314 = vector.broadcast %235 : vector<1x8xf32> to vector<8x8xf32>
    %315 = arith.addf %313, %314 : vector<8x8xf32>
    %316 = vector.extract_strided_slice %230 {offsets = [32, 0], sizes = [8, 8], strides = [1, 1]} : vector<64x8xf32> to vector<8x8xf32>
    %317 = arith.addf %315, %316 : vector<8x8xf32>
    %318 = vector.extract_strided_slice %12 {offsets = [32, 0], sizes = [8, 1], strides = [1, 1]} : vector<64x1xf32> to vector<8x1xf32>
    %319 = vector.broadcast %318 : vector<8x1xf32> to vector<8x8xf32>
    %320 = arith.mulf %317, %319 : vector<8x8xf32>
    %cst_47 = arith.constant 1.000000e+00 : f32
    %321 = vector.broadcast %cst_47 : f32 to vector<8x1xf32>
    %322 = arith.subf %321, %318 : vector<8x1xf32>
    %323 = vector.broadcast %322 : vector<8x1xf32> to vector<8x8xf32>
    %324 = arith.mulf %304, %323 : vector<8x8xf32>
    %325 = arith.addf %320, %324 : vector<8x8xf32>
    %cst_48 = arith.constant dense<0xFF800000> : vector<8xf32>
    %326 = vector.multi_reduction <maximumf>, %325, %cst_48 [1] : vector<8x8xf32> to vector<8xf32>
    %327 = vector.shape_cast %326 : vector<8xf32> to vector<8x1xf32>
    %328 = vector.broadcast %327 : vector<8x1xf32> to vector<8x8xf32>
    %329 = arith.subf %325, %328 : vector<8x8xf32>
    %330 = math.exp %329 : vector<8x8xf32>
    %cst_49 = arith.constant dense<0.000000e+00> : vector<8x8xf32>
    %331 = tpu.matmul %330, %238, %cst_49 {dimension_numbers = #tpu.dot_dimension_numbers<[1], [0], [0], [1], [0, 0, 1, 1], [], []>} : vector<8x8xf32>, vector<8x8xf32>, vector<8x8xf32> -> vector<8x8xf32>
    %332 = math.log %331 : vector<8x8xf32>
    %333 = vector.broadcast %327 : vector<8x1xf32> to vector<8x8xf32>
    %334 = arith.addf %332, %333 : vector<8x8xf32>
    %335 = vector.broadcast %235 : vector<1x8xf32> to vector<8x8xf32>
    %336 = arith.addf %334, %335 : vector<8x8xf32>
    %337 = vector.extract_strided_slice %230 {offsets = [40, 0], sizes = [8, 8], strides = [1, 1]} : vector<64x8xf32> to vector<8x8xf32>
    %338 = arith.addf %336, %337 : vector<8x8xf32>
    %339 = vector.extract_strided_slice %12 {offsets = [40, 0], sizes = [8, 1], strides = [1, 1]} : vector<64x1xf32> to vector<8x1xf32>
    %340 = vector.broadcast %339 : vector<8x1xf32> to vector<8x8xf32>
    %341 = arith.mulf %338, %340 : vector<8x8xf32>
    %cst_50 = arith.constant 1.000000e+00 : f32
    %342 = vector.broadcast %cst_50 : f32 to vector<8x1xf32>
    %343 = arith.subf %342, %339 : vector<8x1xf32>
    %344 = vector.broadcast %343 : vector<8x1xf32> to vector<8x8xf32>
    %345 = arith.mulf %325, %344 : vector<8x8xf32>
    %346 = arith.addf %341, %345 : vector<8x8xf32>
    %cst_51 = arith.constant dense<0xFF800000> : vector<8xf32>
    %347 = vector.multi_reduction <maximumf>, %346, %cst_51 [1] : vector<8x8xf32> to vector<8xf32>
    %348 = vector.shape_cast %347 : vector<8xf32> to vector<8x1xf32>
    %349 = vector.broadcast %348 : vector<8x1xf32> to vector<8x8xf32>
    %350 = arith.subf %346, %349 : vector<8x8xf32>
    %351 = math.exp %350 : vector<8x8xf32>
    %cst_52 = arith.constant dense<0.000000e+00> : vector<8x8xf32>
    %352 = tpu.matmul %351, %238, %cst_52 {dimension_numbers = #tpu.dot_dimension_numbers<[1], [0], [0], [1], [0, 0, 1, 1], [], []>} : vector<8x8xf32>, vector<8x8xf32>, vector<8x8xf32> -> vector<8x8xf32>
    %353 = math.log %352 : vector<8x8xf32>
    %354 = vector.broadcast %348 : vector<8x1xf32> to vector<8x8xf32>
    %355 = arith.addf %353, %354 : vector<8x8xf32>
    %356 = vector.broadcast %235 : vector<1x8xf32> to vector<8x8xf32>
    %357 = arith.addf %355, %356 : vector<8x8xf32>
    %358 = vector.extract_strided_slice %230 {offsets = [48, 0], sizes = [8, 8], strides = [1, 1]} : vector<64x8xf32> to vector<8x8xf32>
    %359 = arith.addf %357, %358 : vector<8x8xf32>
    %360 = vector.extract_strided_slice %12 {offsets = [48, 0], sizes = [8, 1], strides = [1, 1]} : vector<64x1xf32> to vector<8x1xf32>
    %361 = vector.broadcast %360 : vector<8x1xf32> to vector<8x8xf32>
    %362 = arith.mulf %359, %361 : vector<8x8xf32>
    %cst_53 = arith.constant 1.000000e+00 : f32
    %363 = vector.broadcast %cst_53 : f32 to vector<8x1xf32>
    %364 = arith.subf %363, %360 : vector<8x1xf32>
    %365 = vector.broadcast %364 : vector<8x1xf32> to vector<8x8xf32>
    %366 = arith.mulf %346, %365 : vector<8x8xf32>
    %367 = arith.addf %362, %366 : vector<8x8xf32>
    %cst_54 = arith.constant dense<0xFF800000> : vector<8xf32>
    %368 = vector.multi_reduction <maximumf>, %367, %cst_54 [1] : vector<8x8xf32> to vector<8xf32>
    %369 = vector.shape_cast %368 : vector<8xf32> to vector<8x1xf32>
    %370 = vector.broadcast %369 : vector<8x1xf32> to vector<8x8xf32>
    %371 = arith.subf %367, %370 : vector<8x8xf32>
    %372 = math.exp %371 : vector<8x8xf32>
    %cst_55 = arith.constant dense<0.000000e+00> : vector<8x8xf32>
    %373 = tpu.matmul %372, %238, %cst_55 {dimension_numbers = #tpu.dot_dimension_numbers<[1], [0], [0], [1], [0, 0, 1, 1], [], []>} : vector<8x8xf32>, vector<8x8xf32>, vector<8x8xf32> -> vector<8x8xf32>
    %374 = math.log %373 : vector<8x8xf32>
    %375 = vector.broadcast %369 : vector<8x1xf32> to vector<8x8xf32>
    %376 = arith.addf %374, %375 : vector<8x8xf32>
    %377 = vector.broadcast %235 : vector<1x8xf32> to vector<8x8xf32>
    %378 = arith.addf %376, %377 : vector<8x8xf32>
    %379 = vector.extract_strided_slice %230 {offsets = [56, 0], sizes = [8, 8], strides = [1, 1]} : vector<64x8xf32> to vector<8x8xf32>
    %380 = arith.addf %378, %379 : vector<8x8xf32>
    %381 = vector.extract_strided_slice %12 {offsets = [56, 0], sizes = [8, 1], strides = [1, 1]} : vector<64x1xf32> to vector<8x1xf32>
    %382 = vector.broadcast %381 : vector<8x1xf32> to vector<8x8xf32>
    %383 = arith.mulf %380, %382 : vector<8x8xf32>
    %cst_56 = arith.constant 1.000000e+00 : f32
    %384 = vector.broadcast %cst_56 : f32 to vector<8x1xf32>
    %385 = arith.subf %384, %381 : vector<8x1xf32>
    %386 = vector.broadcast %385 : vector<8x1xf32> to vector<8x8xf32>
    %387 = arith.mulf %367, %386 : vector<8x8xf32>
    %388 = arith.addf %383, %387 : vector<8x8xf32>
    %389 = vector.broadcast %233 : vector<1x8xf32> to vector<8x8xf32>
    %390 = arith.addf %388, %389 : vector<8x8xf32>
    %cst_57 = arith.constant dense<0xFF800000> : vector<8xf32>
    %391 = vector.multi_reduction <maximumf>, %390, %cst_57 [1] : vector<8x8xf32> to vector<8xf32>
    %392 = vector.shape_cast %391 : vector<8xf32> to vector<8x1xf32>
    %393 = vector.broadcast %392 : vector<8x1xf32> to vector<8x8xf32>
    %394 = arith.subf %390, %393 : vector<8x8xf32>
    %395 = math.exp %394 : vector<8x8xf32>
    %cst_58 = arith.constant dense<0.000000e+00> : vector<8xf32>
    %396 = vector.multi_reduction <add>, %395, %cst_58 [1] : vector<8x8xf32> to vector<8xf32>
    %397 = vector.shape_cast %396 : vector<8xf32> to vector<8x1xf32>
    %398 = math.log %397 : vector<8x1xf32>
    %399 = arith.addf %398, %392 : vector<8x1xf32>
    %400 = tpu.iota {dimensions = array<i32: 1>} : vector<64x8xi32>
    %c0_59 = arith.constant 0 : index
    %c0_60 = arith.constant 0 : index
    %401 = vector.load %arg1[%c0_59, %c0_60] : memref<64x1xi32, #tpu.memory_space<vmem>>, vector<64x1xi32>
    %402 = vector.broadcast %401 : vector<64x1xi32> to vector<64x8xi32>
    %403 = arith.cmpi eq, %400, %402 : vector<64x8xi32>
    %404 = arith.extui %403 : vector<64x8xi1> to vector<64x8xi32>
    %405 = arith.sitofp %404 : vector<64x8xi32> to vector<64x8xf32>
    %406 = arith.mulf %230, %405 : vector<64x8xf32>
    %cst_61 = arith.constant dense<0.000000e+00> : vector<64xf32>
    %407 = vector.multi_reduction <add>, %406, %cst_61 [1] : vector<64x8xf32> to vector<64xf32>
    %408 = vector.shape_cast %407 : vector<64xf32> to vector<64x1xf32>
    %409 = vector.extract_strided_slice %405 {offsets = [0, 0], sizes = [56, 8], strides = [1, 1]} : vector<64x8xf32> to vector<56x8xf32>
    %cst_62 = arith.constant dense<0.000000e+00> : vector<56x8xf32>
    %410 = tpu.matmul %409, %231, %cst_62 {dimension_numbers = #tpu.dot_dimension_numbers<[1], [0], [0], [1], [0, 0, 1, 1], [], []>} : vector<56x8xf32>, vector<8x8xf32>, vector<56x8xf32> -> vector<56x8xf32>
    %411 = vector.extract_strided_slice %405 {offsets = [8, 0], sizes = [56, 8], strides = [1, 1]} : vector<64x8xf32> to vector<56x8xf32>
    %412 = arith.mulf %410, %411 : vector<56x8xf32>
    %cst_63 = arith.constant dense<0.000000e+00> : vector<56xf32>
    %413 = vector.multi_reduction <add>, %412, %cst_63 [1] : vector<56x8xf32> to vector<56xf32>
    %414 = vector.shape_cast %413 : vector<56xf32> to vector<56x1xf32>
    %415 = vector.extract_strided_slice %405 {offsets = [0, 0], sizes = [8, 8], strides = [1, 1]} : vector<64x8xf32> to vector<8x8xf32>
    %416 = vector.broadcast %232 : vector<1x8xf32> to vector<8x8xf32>
    %417 = arith.mulf %415, %416 : vector<8x8xf32>
    %cst_64 = arith.constant dense<0.000000e+00> : vector<8xf32>
    %418 = vector.multi_reduction <add>, %417, %cst_64 [1] : vector<8x8xf32> to vector<8xf32>
    %419 = vector.shape_cast %418 : vector<8xf32> to vector<8x1xf32>
    %cst_65 = arith.constant 0.000000e+00 : f32
    %420 = vector.broadcast %cst_65 : f32 to vector<8x8xf32>
    %421 = vector.extract_strided_slice %12 {offsets = [0, 0], sizes = [8, 1], strides = [1, 1]} : vector<64x1xf32> to vector<8x1xf32>
    %422 = vector.extract_strided_slice %12 {offsets = [8, 0], sizes = [8, 1], strides = [1, 1]} : vector<64x1xf32> to vector<8x1xf32>
    %423 = vector.extract_strided_slice %414 {offsets = [0, 0], sizes = [8, 1], strides = [1, 1]} : vector<56x1xf32> to vector<8x1xf32>
    %424 = arith.mulf %423, %422 : vector<8x1xf32>
    %425 = arith.addf %419, %424 : vector<8x1xf32>
    %426 = vector.extract_strided_slice %408 {offsets = [0, 0], sizes = [8, 1], strides = [1, 1]} : vector<64x1xf32> to vector<8x1xf32>
    %427 = arith.mulf %426, %421 : vector<8x1xf32>
    %428 = arith.addf %425, %427 : vector<8x1xf32>
    %429 = vector.extract_strided_slice %405 {offsets = [0, 0], sizes = [8, 8], strides = [1, 1]} : vector<64x8xf32> to vector<8x8xf32>
    %430 = arith.subf %421, %422 : vector<8x1xf32>
    %431 = vector.broadcast %430 : vector<8x1xf32> to vector<8x8xf32>
    %432 = arith.mulf %429, %431 : vector<8x8xf32>
    %433 = arith.addf %420, %432 : vector<8x8xf32>
    %434 = vector.extract_strided_slice %12 {offsets = [8, 0], sizes = [8, 1], strides = [1, 1]} : vector<64x1xf32> to vector<8x1xf32>
    %435 = vector.extract_strided_slice %12 {offsets = [16, 0], sizes = [8, 1], strides = [1, 1]} : vector<64x1xf32> to vector<8x1xf32>
    %436 = vector.extract_strided_slice %414 {offsets = [8, 0], sizes = [8, 1], strides = [1, 1]} : vector<56x1xf32> to vector<8x1xf32>
    %437 = arith.mulf %436, %435 : vector<8x1xf32>
    %438 = arith.addf %428, %437 : vector<8x1xf32>
    %439 = vector.extract_strided_slice %408 {offsets = [8, 0], sizes = [8, 1], strides = [1, 1]} : vector<64x1xf32> to vector<8x1xf32>
    %440 = arith.mulf %439, %434 : vector<8x1xf32>
    %441 = arith.addf %438, %440 : vector<8x1xf32>
    %442 = vector.extract_strided_slice %405 {offsets = [8, 0], sizes = [8, 8], strides = [1, 1]} : vector<64x8xf32> to vector<8x8xf32>
    %443 = arith.subf %434, %435 : vector<8x1xf32>
    %444 = vector.broadcast %443 : vector<8x1xf32> to vector<8x8xf32>
    %445 = arith.mulf %442, %444 : vector<8x8xf32>
    %446 = arith.addf %433, %445 : vector<8x8xf32>
    %447 = vector.extract_strided_slice %12 {offsets = [16, 0], sizes = [8, 1], strides = [1, 1]} : vector<64x1xf32> to vector<8x1xf32>
    %448 = vector.extract_strided_slice %12 {offsets = [24, 0], sizes = [8, 1], strides = [1, 1]} : vector<64x1xf32> to vector<8x1xf32>
    %449 = vector.extract_strided_slice %414 {offsets = [16, 0], sizes = [8, 1], strides = [1, 1]} : vector<56x1xf32> to vector<8x1xf32>
    %450 = arith.mulf %449, %448 : vector<8x1xf32>
    %451 = arith.addf %441, %450 : vector<8x1xf32>
    %452 = vector.extract_strided_slice %408 {offsets = [16, 0], sizes = [8, 1], strides = [1, 1]} : vector<64x1xf32> to vector<8x1xf32>
    %453 = arith.mulf %452, %447 : vector<8x1xf32>
    %454 = arith.addf %451, %453 : vector<8x1xf32>
    %455 = vector.extract_strided_slice %405 {offsets = [16, 0], sizes = [8, 8], strides = [1, 1]} : vector<64x8xf32> to vector<8x8xf32>
    %456 = arith.subf %447, %448 : vector<8x1xf32>
    %457 = vector.broadcast %456 : vector<8x1xf32> to vector<8x8xf32>
    %458 = arith.mulf %455, %457 : vector<8x8xf32>
    %459 = arith.addf %446, %458 : vector<8x8xf32>
    %460 = vector.extract_strided_slice %12 {offsets = [24, 0], sizes = [8, 1], strides = [1, 1]} : vector<64x1xf32> to vector<8x1xf32>
    %461 = vector.extract_strided_slice %12 {offsets = [32, 0], sizes = [8, 1], strides = [1, 1]} : vector<64x1xf32> to vector<8x1xf32>
    %462 = vector.extract_strided_slice %414 {offsets = [24, 0], sizes = [8, 1], strides = [1, 1]} : vector<56x1xf32> to vector<8x1xf32>
    %463 = arith.mulf %462, %461 : vector<8x1xf32>
    %464 = arith.addf %454, %463 : vector<8x1xf32>
    %465 = vector.extract_strided_slice %408 {offsets = [24, 0], sizes = [8, 1], strides = [1, 1]} : vector<64x1xf32> to vector<8x1xf32>
    %466 = arith.mulf %465, %460 : vector<8x1xf32>
    %467 = arith.addf %464, %466 : vector<8x1xf32>
    %468 = vector.extract_strided_slice %405 {offsets = [24, 0], sizes = [8, 8], strides = [1, 1]} : vector<64x8xf32> to vector<8x8xf32>
    %469 = arith.subf %460, %461 : vector<8x1xf32>
    %470 = vector.broadcast %469 : vector<8x1xf32> to vector<8x8xf32>
    %471 = arith.mulf %468, %470 : vector<8x8xf32>
    %472 = arith.addf %459, %471 : vector<8x8xf32>
    %473 = vector.extract_strided_slice %12 {offsets = [32, 0], sizes = [8, 1], strides = [1, 1]} : vector<64x1xf32> to vector<8x1xf32>
    %474 = vector.extract_strided_slice %12 {offsets = [40, 0], sizes = [8, 1], strides = [1, 1]} : vector<64x1xf32> to vector<8x1xf32>
    %475 = vector.extract_strided_slice %414 {offsets = [32, 0], sizes = [8, 1], strides = [1, 1]} : vector<56x1xf32> to vector<8x1xf32>
    %476 = arith.mulf %475, %474 : vector<8x1xf32>
    %477 = arith.addf %467, %476 : vector<8x1xf32>
    %478 = vector.extract_strided_slice %408 {offsets = [32, 0], sizes = [8, 1], strides = [1, 1]} : vector<64x1xf32> to vector<8x1xf32>
    %479 = arith.mulf %478, %473 : vector<8x1xf32>
    %480 = arith.addf %477, %479 : vector<8x1xf32>
    %481 = vector.extract_strided_slice %405 {offsets = [32, 0], sizes = [8, 8], strides = [1, 1]} : vector<64x8xf32> to vector<8x8xf32>
    %482 = arith.subf %473, %474 : vector<8x1xf32>
    %483 = vector.broadcast %482 : vector<8x1xf32> to vector<8x8xf32>
    %484 = arith.mulf %481, %483 : vector<8x8xf32>
    %485 = arith.addf %472, %484 : vector<8x8xf32>
    %486 = vector.extract_strided_slice %12 {offsets = [40, 0], sizes = [8, 1], strides = [1, 1]} : vector<64x1xf32> to vector<8x1xf32>
    %487 = vector.extract_strided_slice %12 {offsets = [48, 0], sizes = [8, 1], strides = [1, 1]} : vector<64x1xf32> to vector<8x1xf32>
    %488 = vector.extract_strided_slice %414 {offsets = [40, 0], sizes = [8, 1], strides = [1, 1]} : vector<56x1xf32> to vector<8x1xf32>
    %489 = arith.mulf %488, %487 : vector<8x1xf32>
    %490 = arith.addf %480, %489 : vector<8x1xf32>
    %491 = vector.extract_strided_slice %408 {offsets = [40, 0], sizes = [8, 1], strides = [1, 1]} : vector<64x1xf32> to vector<8x1xf32>
    %492 = arith.mulf %491, %486 : vector<8x1xf32>
    %493 = arith.addf %490, %492 : vector<8x1xf32>
    %494 = vector.extract_strided_slice %405 {offsets = [40, 0], sizes = [8, 8], strides = [1, 1]} : vector<64x8xf32> to vector<8x8xf32>
    %495 = arith.subf %486, %487 : vector<8x1xf32>
    %496 = vector.broadcast %495 : vector<8x1xf32> to vector<8x8xf32>
    %497 = arith.mulf %494, %496 : vector<8x8xf32>
    %498 = arith.addf %485, %497 : vector<8x8xf32>
    %499 = vector.extract_strided_slice %12 {offsets = [48, 0], sizes = [8, 1], strides = [1, 1]} : vector<64x1xf32> to vector<8x1xf32>
    %500 = vector.extract_strided_slice %12 {offsets = [56, 0], sizes = [8, 1], strides = [1, 1]} : vector<64x1xf32> to vector<8x1xf32>
    %501 = vector.extract_strided_slice %414 {offsets = [48, 0], sizes = [8, 1], strides = [1, 1]} : vector<56x1xf32> to vector<8x1xf32>
    %502 = arith.mulf %501, %500 : vector<8x1xf32>
    %503 = arith.addf %493, %502 : vector<8x1xf32>
    %504 = vector.extract_strided_slice %408 {offsets = [48, 0], sizes = [8, 1], strides = [1, 1]} : vector<64x1xf32> to vector<8x1xf32>
    %505 = arith.mulf %504, %499 : vector<8x1xf32>
    %506 = arith.addf %503, %505 : vector<8x1xf32>
    %507 = vector.extract_strided_slice %405 {offsets = [48, 0], sizes = [8, 8], strides = [1, 1]} : vector<64x8xf32> to vector<8x8xf32>
    %508 = arith.subf %499, %500 : vector<8x1xf32>
    %509 = vector.broadcast %508 : vector<8x1xf32> to vector<8x8xf32>
    %510 = arith.mulf %507, %509 : vector<8x8xf32>
    %511 = arith.addf %498, %510 : vector<8x8xf32>
    %512 = vector.extract_strided_slice %12 {offsets = [56, 0], sizes = [8, 1], strides = [1, 1]} : vector<64x1xf32> to vector<8x1xf32>
    %cst_66 = arith.constant 0.000000e+00 : f32
    %513 = vector.broadcast %cst_66 : f32 to vector<8x1xf32>
    %514 = vector.extract_strided_slice %405 {offsets = [56, 0], sizes = [8, 8], strides = [1, 1]} : vector<64x8xf32> to vector<8x8xf32>
    %515 = arith.subf %512, %513 : vector<8x1xf32>
    %516 = vector.broadcast %515 : vector<8x1xf32> to vector<8x8xf32>
    %517 = arith.mulf %514, %516 : vector<8x8xf32>
    %518 = arith.addf %511, %517 : vector<8x8xf32>
    %519 = vector.broadcast %233 : vector<1x8xf32> to vector<8x8xf32>
    %520 = arith.mulf %518, %519 : vector<8x8xf32>
    %cst_67 = arith.constant dense<0.000000e+00> : vector<8xf32>
    %521 = vector.multi_reduction <add>, %520, %cst_67 [1] : vector<8x8xf32> to vector<8xf32>
    %522 = vector.shape_cast %521 : vector<8xf32> to vector<8x1xf32>
    %523 = arith.addf %506, %522 : vector<8x1xf32>
    %524 = vector.extract_strided_slice %230 {offsets = [56, 0], sizes = [8, 8], strides = [1, 1]} : vector<64x8xf32> to vector<8x8xf32>
    %525 = arith.mulf %524, %518 : vector<8x8xf32>
    %cst_68 = arith.constant dense<0.000000e+00> : vector<8xf32>
    %526 = vector.multi_reduction <add>, %525, %cst_68 [1] : vector<8x8xf32> to vector<8xf32>
    %527 = vector.shape_cast %526 : vector<8xf32> to vector<8x1xf32>
    %528 = vector.extract_strided_slice %12 {offsets = [56, 0], sizes = [8, 1], strides = [1, 1]} : vector<64x1xf32> to vector<8x1xf32>
    %529 = arith.mulf %527, %528 : vector<8x1xf32>
    %530 = arith.addf %523, %529 : vector<8x1xf32>
    %531 = vector.extract_strided_slice %12 {offsets = [0, 0], sizes = [8, 1], strides = [1, 1]} : vector<64x1xf32> to vector<8x1xf32>
    %532 = arith.subf %530, %399 : vector<8x1xf32>
    %533 = arith.mulf %532, %531 : vector<8x1xf32>
    %cst_69 = arith.constant dense<0.000000e+00> : vector<1xf32>
    %534 = vector.multi_reduction <add>, %533, %cst_69 [0] : vector<8x1xf32> to vector<1xf32>
    %535 = vector.shape_cast %534 : vector<1xf32> to vector<1x1xf32>
    %cst_70 = arith.constant 0.000000e+00 : f32
    %536 = vector.broadcast %cst_70 : f32 to vector<1x1xf32>
    %537 = arith.subf %536, %535 : vector<1x1xf32>
    %c0_71 = arith.constant 0 : index
    %c0_72 = arith.constant 0 : index
    %538 = vector.load %arg13[%c0_71, %c0_72] : memref<1x1xf32, #tpu.memory_space<vmem>>, vector<1x1xf32>
    tpu.vector_store %arg13[%c0_71, %c0_72], %537 {strides = array<i32>} : memref<1x1xf32, #tpu.memory_space<vmem>>, vector<1x1xf32>,
    return
  }
}

</mosaic_0001>

<bundles_post_ra>
// kernel: lstm_crf_forward.1
= control target key start
LH: loop header
LB: loop body
LE: loop exit
PB: predicated region body
PF: predicated region fallthrough
CT: control target
= control target key end

     0   :  { %v2630_v2 = vmov 0   ;;  %s3529_s0 = inlined_call_operand.vmem [shape: s32[64,1], index: 0, kind: input, shape index: {}]   ;;  %s3530_s1 = inlined_call_operand.vmem [shape: s32[64,1], index: 1, kind: input, shape index: {}]   ;;  %s3531_s2 = inlined_call_operand.vmem [shape: bf16[64,256], index: 2, kind: input, shape index: {}]   ;;  %s3532_s3 = inlined_call_operand.vmem [shape: bf16[64,256], index: 3, kind: input, shape index: {}]   ;;  %s3533_s4 = inlined_call_operand.vmem [shape: bf16[64,8], index: 4, kind: input, shape index: {}]   ;;  %s3534_s5 = inlined_call_operand.vmem [shape: bf16[64,8], index: 5, kind: input, shape index: {}]   ;;  %s3535_s6 = inlined_call_operand.vmem [shape: f32[1,8], index: 6, kind: input, shape index: {}]   ;;  %s3536_s7 = inlined_call_operand.vmem [shape: f32[8,8], index: 7, kind: input, shape index: {}]   ;;  %s3537_s8 = inlined_call_operand.vmem [shape: f32[1,8], index: 8, kind: input, shape index: {}]   ;;  %s3538_s9 = inlined_call_operand.vmem [shape: f32[1,8], index: 9, kind: input, shape index: {}]   ;;  %s3539_s10 = inlined_call_operand.vmem [shape: f32[1,256], index: 10, kind: input, shape index: {}]   ;;  %s3540_s11 = inlined_call_operand.vmem [shape: f32[1,256], index: 11, kind: input, shape index: {}]   ;;  %s3541_s12 = inlined_call_operand.vmem [shape: f32[1,256], index: 12, kind: input, shape index: {}]   ;;  %s3542_s13 = inlined_call_operand.hbm [shape: f32[1,1], index: 13, kind: output, shape index: {}]  }
   0x1   :  { %v48_v0 = vld [vmem:[%s3529_s0 + $0x10] sm:$0xff]  ;;  %v46_v1 = vld [vmem:[%s3529_s0] sm:$0xff]  ;;  %2486 = vset.pattern.permute.xlu1 %v2630_v2  ;;  %2485 = vset.pattern.permute.xlu0 %v2630_v2  ;;  %v49_v3 = vld [vmem:[%s3529_s0 + $0x18] sm:$0xff] }
   0x2   :  { %63 = vperm.xlu1 %2486, %v48_v0   ;;  %57 = vperm.xlu0 %2485, %v46_v1   ;;  %v2719_v4 = vld [vmem:[%s3529_s0 + $0x8] sm:$0xff]  ;;  %v2487_v5 = vld [vmem:[%s3531_s2 + $0x34] ss:$8 sps:$4 sm:$0xff]   ;;  %v2489_v6 = vld [vmem:[%s3531_s2 + $0x30] ss:$8 sps:$4 sm:$0xff]  }
   0x3   :  { %201 = vmatprep.mubr.bf16.mxu0 %v2630_v2  ;;  %369 = vmatprep.mubr.bf16.mxu1 %v2630_v2  ;;  %v2490_v7 = vld [vmem:[%s3531_s2 + $0x24] ss:$8 sps:$4 sm:$0xff]   ;;  %v2492_v10 = vld [vmem:[%s3531_s2 + $0x20] ss:$8 sps:$4 sm:$0xff]   ;;  %v53_v11 = vld [vmem:[%s3529_s0 + $0x38] sm:$0xff] }
   0x4   :  { %v51_v8 = vld [vmem:[%s3529_s0 + $0x28] sm:$0xff]  ;;  %v50_v9 = vld [vmem:[%s3529_s0 + $0x20] sm:$0xff]  ;;  %177 = vmatprep.subr.bf16.mxu0 %v2487_v5  ;;  %v52_v12 = vld [vmem:[%s3529_s0 + $0x30] sm:$0xff] }
   0x5   :  { %178 = vmatpush1.bf16.msra.mxu0 %v2489_v6  ;;  %v2493_v13 = vld [vmem:[%s3531_s2 + $0x14] ss:$8 sps:$4 sm:$0xff]   ;;  %v2495_v14 = vld [vmem:[%s3531_s2 + $0x10] ss:$8 sps:$4 sm:$0xff]   ;;  %v2496_v15 = vld [vmem:[%s3531_s2 + $0x4] ss:$8 sps:$4 sm:$0xff]  }
   0x6   :  { %66 = vperm.xlu1 %2486, %v49_v3   ;;  %60 = vperm.xlu0 %2485, %v2719_v4   ;;  %v2498_v16 = vld [vmem:[%s3531_s2] ss:$8 sps:$4 sm:$0xff]   ;;  %v2763_v17 = vld [vmem:[%s3532_s3 + $0x34] ss:$8 sps:$4 sm:$0xff]   ;;  %v2768_v18 = vld [vmem:[%s3532_s3 + $0x30] ss:$8 sps:$4 sm:$0xff]  }
   0x7   :  { %179 = vmatprep.subr.bf16.mxu0 %v2490_v7  ;;  %345 = vmatprep.subr.bf16.mxu1 %v2763_v17 }
   0x8   :  { %346 = vmatpush1.bf16.msra.mxu1 %v2768_v18 }
   0x9   :  { %180 = vmatpush1.bf16.msra.mxu0 %v2492_v10 }
   0xa   :  { %72 = vperm.xlu1 %2486, %v51_v8   ;;  %69 = vperm.xlu0 %2485, %v50_v9  }
   0xb   :  { %181 = vmatprep.subr.bf16.mxu0 %v2493_v13 }
   0xd   :  { %182 = vmatpush1.bf16.msra.mxu0 %v2495_v14 }
   0xe   :  { %78 = vperm.xlu1 %2486, %v53_v11   ;;  %75 = vperm.xlu0 %2485, %v52_v12  }
   0xf   :  { %183 = vmatprep.subr.bf16.mxu0 %v2496_v15 }
  0x10   :  { %18 = vsyncpa [#allocation3], 0  ;;  %v2775_v19 = vld [vmem:[%s3532_s3 + $0x24] ss:$8 sps:$4 sm:$0xff]   ;;  %v2780_v20 = vld [vmem:[%s3532_s3 + $0x20] ss:$8 sps:$4 sm:$0xff]   ;;  %v54_v25 = vlaneseq }
  0x11   :  { %184 = vmatpush1.bf16.msra.mxu0 %v2498_v16  ;;  %347 = vmatprep.subr.bf16.mxu1 %v2775_v19  ;;  %v2787_v21 = vld [vmem:[%s3532_s3 + $0x14] ss:$8 sps:$4 sm:$0xff]   ;;  %v2793_v22 = vld [vmem:[%s3532_s3 + $0x10] ss:$8 sps:$4 sm:$0xff]   ;;  %v2800_v23 = vld [vmem:[%s3532_s3 + $0x4] ss:$8 sps:$4 sm:$0xff]  }
  0x12   :  { %509 = vmatprep.subr.bf16.mxu0 %v2763_v17  ;;  %348 = vmatpush1.bf16.msra.mxu1 %v2780_v20  ;;  %v2805_v24 = vld [vmem:[%s3532_s3] ss:$8 sps:$4 sm:$0xff]   ;;  %v2820_v26 = vand.u32 127, %v54_v25  ;;  %v2631_v30 = vmov 0.0   ;;  %vm156_vm2 = vcmask 523264   ;;  %v281_v56 = vshrl.u32 %v54_v25, 7 }
  0x13   :  { %349 = vmatprep.subr.bf16.mxu1 %v2787_v21  ;;  %v266_v61 = vld [vmem:[%s3539_s10] sm:$0x3]  ;;  %s2632_s24 = smov 64   ;;  %vm243_vm9 = vcmp.ne.s32.totalorder %v2719_v4, 0  ;;  %vm1182_vm10 = vcmask 64512   ;;  %vm2633_vm12 = vmmov 0  }
  0x14   :  { %v2862_v59 = vsub.s32 0, %v281_v56  ;;  %v2867_v62 = vsub.s32 1, %v281_v56 }
  0x16   :  { %350 = vmatpush1.bf16.msra.mxu1 %v2793_v22  ;;  %v283_v0 = vrot.slane %v266_v61, %v2862_v59  ;;  %v287_v6 = vrot.slane %v266_v61, %v2867_v62 }
  0x17   :  { %351 = vmatprep.subr.bf16.mxu1 %v2800_v23 }
  0x1a   :  { %352 = vmatpush1.bf16.msra.mxu1 %v2805_v24 }
  0x1b   :  { %438 = vmatprep.subr.bf16.mxu1 %v2763_v17 }
  0x1d   :  { %370 = vmatmul.mubr.bf16.vlgmr.msra.gmra.mxu1 %v2630_v2 }
  0x1e   :  { %439 = vmatpush1.bf16.msra.mxu1 %v2768_v18  ;;  %462 = vmatprep.mubr.bf16.mxu1 %v2630_v2 }
  0x1f   :  { %440 = vmatprep.subr.bf16.mxu1 %v2775_v19 }
  0x22   :  { %441 = vmatpush1.bf16.msra.mxu1 %v2780_v20 }
  0x23   :  { %442 = vmatprep.subr.bf16.mxu1 %v2787_v21 }
  0x26   :  { %443 = vmatpush1.bf16.msra.mxu1 %v2793_v22 }
  0x27   :  { %444 = vmatprep.subr.bf16.mxu1 %v2800_v23 }
  0x2a   :  { %445 = vmatpush1.bf16.msra.mxu1 %v2805_v24 }
  0x2b   :  { %580 = vmatprep.subr.bf16.mxu1 %v2763_v17 }
  0x7d   :  { %v58_v27 = vpop.permute.xlu0 %57  ;;  %v64_v28 = vpop.permute.xlu1 %63 }
  0x7e   :  { %vm80_vm0 = vcmp.eq.s32.totalorder %v2820_v26, %v58_v27  ;;  %vm82_vm3 = vcmp.eq.s32.totalorder %v2820_v26, %v64_v28 }
  0x7f   :  { %v2266_v31 = vsel %vm80_vm0, 1.0, %v2631_v30  ;;  %v2268_v35 = vsel %vm82_vm3, 1.0, %v2631_v30 }
  0x81   :  { %v61_v29 = vpop.permute.xlu0 %60  ;;  %v67_v34 = vpop.permute.xlu1 %66 }
  0x82   :  { %vm81_vm1 = vcmp.eq.s32.totalorder %v2820_v26, %v61_v29  ;;  %vm83_vm4 = vcmp.eq.s32.totalorder %v2820_v26, %v67_v34 }
  0x83   :  { %v2267_v32 = vsel %vm81_vm1, 1.0, %v2631_v30  ;;  %v2269_v36 = vsel %vm83_vm4, 1.0, %v2631_v30 }
  0x84   :  { %v104_v33 = vpack.c.bf16 %v2267_v32, %v2266_v31  ;;  %v105_v39 = vpack.c.bf16 %v2269_v36, %v2268_v35 }
  0x85   :  { %v73_v37 = vpop.permute.xlu1 %72  ;;  %v70_v38 = vpop.permute.xlu0 %69 }
  0x86   :  { %2282 = vmatmul.mubr.msk.bf16.vlgmr.msra.gmra.mxu0 %vm156_vm2, %v104_v33  ;;  %vm85_vm5 = vcmp.eq.s32.totalorder %v2820_v26, %v73_v37  ;;  %vm84_vm6 = vcmp.eq.s32.totalorder %v2820_v26, %v70_v38 }
  0x87   :  { %211 = vmatprep.mubr.bf16.mxu0 %v2630_v2  ;;  %510 = vmatpush1.bf16.msra.mxu0 %v2768_v18  ;;  %v2271_v40 = vsel %vm85_vm5, 1.0, %v2631_v30  ;;  %v2270_v41 = vsel %vm84_vm6, 1.0, %v2631_v30 }
  0x88   :  { %511 = vmatprep.subr.bf16.mxu0 %v2775_v19  ;;  %v106_v44 = vpack.c.bf16 %v2271_v40, %v2270_v41 }
  0x89   :  { %v79_v42 = vpop.permute.xlu1 %78  ;;  %v76_v43 = vpop.permute.xlu0 %75 }
  0x8a   :  { %vm87_vm7 = vcmp.eq.s32.totalorder %v2820_v26, %v79_v42  ;;  %vm86_vm8 = vcmp.eq.s32.totalorder %v2820_v26, %v76_v43 }
  0x8b   :  { %512 = vmatpush1.bf16.msra.mxu0 %v2780_v20  ;;  %v2273_v45 = vsel %vm87_vm7, 1.0, %v2631_v30  ;;  %v2272_v46 = vsel %vm86_vm8, 1.0, %v2631_v30 }
  0x8c   :  { %513 = vmatprep.subr.bf16.mxu0 %v2787_v21  ;;  %v107_v47 = vpack.c.bf16 %v2273_v45, %v2272_v46 }
  0x8e   :  { %2283 = vmatmul.mubr.msk.bf16.gmra.mxu0 %vm156_vm2, %v105_v39 }
  0x8f   :  { %221 = vmatprep.mubr.bf16.mxu0 %v2630_v2  ;;  %514 = vmatpush1.bf16.msra.mxu0 %v2793_v22 }
  0x90   :  { %515 = vmatprep.subr.bf16.mxu0 %v2800_v23 }
  0x93   :  { %516 = vmatpush1.bf16.msra.mxu0 %v2805_v24 }
  0x94   :  { %651 = vmatprep.subr.bf16.mxu0 %v2763_v17 }
  0x96   :  { %2284 = vmatmul.mubr.msk.bf16.gmra.mxu0 %vm156_vm2, %v106_v44 }
  0x97   :  { %231 = vmatprep.mubr.bf16.mxu0 %v2630_v2 }
  0x9e   :  { %2285 = vmatmul.mubr.msk.bf16.gmra.mxu0 %vm156_vm2, %v107_v47 }
  0x9f   :  { %533 = vmatprep.mubr.bf16.mxu0 %v2630_v2 }
  0xdd   :  { %v2854_v48 = vpop.f32.mrf.mxu1 }
  0xdf   :  { %v2856_v49 = vpop.f32.mrf.mxu1 }
  0xe1   :  { %v375_v50 = vpop.f32.mrf.mxu1 }
  0xe3   :  { %v376_v51 = vpop.f32.mrf.mxu1 }
 0x146   :  { %v2858_v52 = vpop.f32.mrf.mxu0 }
 0x148   :  { %v2860_v53 = vpop.f32.mrf.mxu0 }
 0x14a   :  { %v207_v54 = vpop.f32.mrf.mxu0 }
 0x14c   :  { %v209_v55 = vpop.f32.mrf.mxu0 }
 0x14e   :  { %v213_v57 = vpop.f32.mrf.mxu0 }
 0x150   :  { %v215_v58 = vpop.f32.mrf.mxu0 }
 0x152   :  { %v217_v60 = vpop.f32.mrf.mxu0 }
 0x154   :  { %v219_v63 = vpop.f32.mrf.mxu0 }
 0x156   :  { %v223_v1 = vpop.f32.mrf.mxu0 }
 0x157   :  { %v559_v3 = vsub.f32 %v217_v60, %v223_v1  ;;  %v630_v5 = vsub.f32 %v223_v1, %v217_v60 }
 0x158   :  { %v225_v7 = vpop.f32.mrf.mxu0 }
 0x159   :  { %v560_v8 = vsub.f32 %v219_v63, %v225_v7  ;;  %v631_v9 = vsub.f32 %v225_v7, %v219_v63  ;;  %v561_v10 = vmul.f32 %v559_v3, %v283_v0  ;;  %v632_v11 = vmul.f32 %v630_v5, %v283_v0 }
 0x15a   :  { %v227_v12 = vpop.f32.mrf.mxu0 }
 0x15b   :  { %v488_v13 = vsub.f32 %v213_v57, %v227_v12  ;;  %v701_v14 = vsub.f32 %v227_v12, %v213_v57  ;;  %v2871_v15 = vadd.f32 %v561_v10, %v223_v1  ;;  %v562_v16 = vmul.f32 %v560_v8, %v287_v6 }
 0x15c   :  { %v229_v25 = vpop.f32.mrf.mxu0  ;;  %v2873_v27 = vadd.f32 %v632_v11, %v217_v60  ;;  %v633_v28 = vmul.f32 %v631_v9, %v287_v6 }
 0x15d   :  { %v489_v29 = vsub.f32 %v215_v58, %v229_v25  ;;  %v702_v31 = vsub.f32 %v229_v25, %v215_v58  ;;  %v490_v32 = vmul.f32 %v488_v13, %v283_v0  ;;  %v2875_v33 = vadd.f32 %v562_v16, %v225_v7 }
 0x15e   :  { %v233_v34 = vpop.f32.mrf.mxu0  ;;  %v2877_v35 = vadd.f32 %v633_v28, %v219_v63  ;;  %v703_v36 = vmul.f32 %v701_v14, %v283_v0 }
 0x15f   :  { %v417_v37 = vsub.f32 %v207_v54, %v233_v34  ;;  %v772_v38 = vsub.f32 %v233_v34, %v207_v54  ;;  %v2879_v39 = vadd.f32 %v490_v32, %v227_v12  ;;  %v491_v40 = vmul.f32 %v489_v29, %v287_v6 }
 0x160   :  { %v235_v41 = vpop.f32.mrf.mxu0  ;;  %v2881_v42 = vadd.f32 %v703_v36, %v213_v57  ;;  %v704_v43 = vmul.f32 %v702_v31, %v287_v6  ;;  %v267_v57 = vld [vmem:[%s3540_s11] sm:$0x3] }
 0x161   :  { %v418_v44 = vsub.f32 %v209_v55, %v235_v41  ;;  %v773_v45 = vsub.f32 %v235_v41, %v209_v55  ;;  %v419_v46 = vmul.f32 %v417_v37, %v283_v0  ;;  %v2883_v47 = vadd.f32 %v491_v40, %v229_v25 }
 0x162   :  { %v237_v50 = vpop.f32.mrf.mxu0  ;;  %v2885_v51 = vadd.f32 %v704_v43, %v215_v58  ;;  %v774_v56 = vmul.f32 %v772_v38, %v283_v0  ;;  %v2899_v14 = vrot.slane %v267_v57, %v2862_v59  ;;  %v2906_v31 = vrot.slane %v267_v57, %v2867_v62 }
 0x163   :  { %v277_v60 = vsub.f32 %v2858_v52, %v237_v50  ;;  %v843_v61 = vsub.f32 %v237_v50, %v2858_v52  ;;  %v421_v63 = vadd.f32 %v419_v46, %v233_v34  ;;  %v420_v1 = vmul.f32 %v418_v44, %v287_v6 }
 0x164   :  { %v239_v3 = vpop.f32.mrf.mxu0  ;;  %v2892_v5 = vadd.f32 %v774_v56, %v207_v54  ;;  %v775_v7 = vmul.f32 %v773_v45, %v287_v6 }
 0x165   :  { %v290_v8 = vmul.f32 %v283_v0, %v277_v60  ;;  %v278_v9 = vsub.f32 %v2860_v53, %v239_v3  ;;  %v844_v58 = vsub.f32 %v239_v3, %v2860_v53  ;;  %v422_v10 = vadd.f32 %v420_v1, %v235_v41 }
 0x166   :  { %v2896_v11 = vadd.f32 %v775_v7, %v209_v55  ;;  %v845_v12 = vmul.f32 %v843_v61, %v283_v0 }
 0x167   :  { %v292_v13 = vadd.f32 %v290_v8, %v237_v50  ;;  %v291_v16 = vmul.f32 %v287_v6, %v278_v9  ;;  %v846_v25 = vmul.f32 %v844_v58, %v287_v6 }
 0x168   :  { %v2902_v28 = vadd.f32 %v845_v12, %v2858_v52  ;;  %v268_v52 = vld [vmem:[%s3541_s12] sm:$0x3] }
 0x169   :  { %v372_v54 = vadd.f32 %v2854_v48, %v292_v13  ;;  %v293_v29 = vadd.f32 %v291_v16, %v239_v3  ;;  %v2909_v32 = vadd.f32 %v846_v25, %v2860_v53  ;;  %v2919_v36 = vrot.slane %v268_v52, %v2862_v59 }
 0x16a   :  { %v2922_v53 = vrot.slane %v268_v52, %v2867_v62 }
 0x16b   :  { %v389_v55 = vmul.f32 %v2899_v14, %v372_v54  ;;  %v374_v0 = vadd.f32 %v2856_v49, %v293_v29 }
 0x16d   :  { %2519 = vtanh.f32 %v389_v55  ;;  %v390_v34 = vmul.f32 %v2906_v31, %v374_v0 }
 0x16f   :  { %2521 = vtanh.f32 %v390_v34 }
 0x17a   :  { %v2520_v48 = vpop.eup %2519 }
 0x17b   :  { %v393_v6 = vmul.f32 %v2520_v48, %v2899_v14 }
 0x17c   :  { %v2522_v37 = vpop.eup %2521 }
 0x17d   :  { %v394_v49 = vmul.f32 %v2522_v37, %v2906_v31  ;;  %v406_v38 = vadd.f32 %v2919_v36, %v393_v6 }
 0x17f   :  { %v407_v40 = vadd.f32 %v2922_v53, %v394_v49  ;;  %v408_v43 = vmul.f32 0.0, %v406_v38 }
 0x181   :  { %v409_v41 = vmul.f32 %v407_v40, %v406_v38 }
 0x183   :  { %411 = vrot.lane.b32.xlu0 %v409_v41, %s2632_s24 }
 0x1f5   :  { %v412_v44 = vpop.permute.xlu0 %411 }
 0x1f6   :  { %v414_v45 = vadd.f32 %v412_v44, %v408_v43 }
 0x1f8   :  { %2523 = vtanh.f32 %v414_v45 }
 0x205   :  { %v2524_v59 = vpop.eup %2523 }
 0x206   :  { %v2928_v46 = vmul.f32 %v2524_v59, %v407_v40 }
 0x208   :  { %v423_v62 = vpack.c.bf16 %v2928_v46, %v2928_v46 }
 0x20a   :  { %425 = vrot.lane.b32.xlu1 %v423_v62, %s2632_s24 }
 0x27c   :  { %v426_v50 = vpop.permute.xlu1 %425 }
 0x27d   :  { %2302 = vmatmul.mubr.msk.bf16.vlgmr.msra.gmra.mxu1 %vm156_vm2, %v426_v50 }
 0x27e   :  { %581 = vmatpush1.bf16.msra.mxu1 %v2768_v18  ;;  %604 = vmatprep.mubr.bf16.mxu1 %v2630_v2 }
 0x27f   :  { %582 = vmatprep.subr.bf16.mxu1 %v2775_v19 }
 0x282   :  { %583 = vmatpush1.bf16.msra.mxu1 %v2780_v20 }
 0x283   :  { %584 = vmatprep.subr.bf16.mxu1 %v2787_v21 }
 0x286   :  { %585 = vmatpush1.bf16.msra.mxu1 %v2793_v22 }
 0x287   :  { %586 = vmatprep.subr.bf16.mxu1 %v2800_v23 }
 0x28a   :  { %587 = vmatpush1.bf16.msra.mxu1 %v2805_v24 }
 0x28b   :  { %722 = vmatprep.subr.bf16.mxu1 %v2763_v17 }
 0x33d   :  { %v464_v56 = vpop.f32.mrf.mxu1 }
 0x33e   :  { %v465_v60 = vadd.f32 %v464_v56, %v421_v63 }
 0x33f   :  { %v466_v61 = vpop.f32.mrf.mxu1 }
 0x340   :  { %v471_v1 = vmul.f32 %v465_v60, %v2899_v14  ;;  %v467_v57 = vadd.f32 %v466_v61, %v422_v10 }
 0x341   :  { %v468_v3 = vpop.f32.mrf.mxu1 }
 0x342   :  { %2525 = vtanh.f32 %v471_v1  ;;  %v472_v7 = vmul.f32 %v467_v57, %v2906_v31 }
 0x343   :  { %v469_v8 = vpop.f32.mrf.mxu1 }
 0x344   :  { %2527 = vtanh.f32 %v472_v7 }
 0x34f   :  { %v2526_v9 = vpop.eup %2525 }
 0x350   :  { %v475_v58 = vmul.f32 %v2526_v9, %v2899_v14 }
 0x351   :  { %v2528_v12 = vpop.eup %2527 }
 0x352   :  { %v476_v13 = vmul.f32 %v2528_v12, %v2906_v31  ;;  %v477_v16 = vadd.f32 %v475_v58, %v2919_v36 }
 0x354   :  { %v478_v63 = vadd.f32 %v476_v13, %v2922_v53  ;;  %v479_v10 = vmul.f32 %v477_v16, %v414_v45 }
 0x356   :  { %v480_v25 = vmul.f32 %v478_v63, %v477_v16 }
 0x358   :  { %482 = vrot.lane.b32.xlu0 %v480_v25, %s2632_s24 }
 0x3ca   :  { %v483_v54 = vpop.permute.xlu0 %482 }
 0x3cb   :  { %v485_v29 = vadd.f32 %v483_v54, %v479_v10 }
 0x3cd   :  { %2529 = vtanh.f32 %v485_v29 }
 0x3da   :  { %v2530_v55 = vpop.eup %2529 }
 0x3db   :  { %v2950_v0 = vmul.f32 %v2530_v55, %v478_v63 }
 0x3dd   :  { %v494_v34 = vpack.c.bf16 %v2950_v0, %v2950_v0 }
 0x3df   :  { %496 = vrot.lane.b32.xlu1 %v494_v34, %s2632_s24 }
 0x451   :  { %v497_v52 = vpop.permute.xlu1 %496 }
 0x452   :  { %2303 = vmatmul.mubr.msk.bf16.vlgmr.msra.gmra.mxu0 %vm156_vm2, %v497_v52 }
 0x453   :  { %652 = vmatpush1.bf16.msra.mxu0 %v2768_v18  ;;  %675 = vmatprep.mubr.bf16.mxu0 %v2630_v2 }
 0x454   :  { %653 = vmatprep.subr.bf16.mxu0 %v2775_v19 }
 0x457   :  { %654 = vmatpush1.bf16.msra.mxu0 %v2780_v20 }
 0x458   :  { %655 = vmatprep.subr.bf16.mxu0 %v2787_v21 }
 0x45b   :  { %656 = vmatpush1.bf16.msra.mxu0 %v2793_v22 }
 0x45c   :  { %657 = vmatprep.subr.bf16.mxu0 %v2800_v23 }
 0x45f   :  { %658 = vmatpush1.bf16.msra.mxu0 %v2805_v24 }
 0x460   :  { %793 = vmatprep.subr.bf16.mxu0 %v2763_v17 }
 0x512   :  { %v535_v48 = vpop.f32.mrf.mxu0 }
 0x513   :  { %v536_v6 = vadd.f32 %v535_v48, %v2879_v39 }
 0x514   :  { %v537_v37 = vpop.f32.mrf.mxu0 }
 0x515   :  { %v542_v49 = vmul.f32 %v536_v6, %v2899_v14  ;;  %v538_v38 = vadd.f32 %v537_v37, %v2883_v47 }
 0x516   :  { %v539_v40 = vpop.f32.mrf.mxu0 }
 0x517   :  { %2531 = vtanh.f32 %v542_v49  ;;  %v543_v41 = vmul.f32 %v538_v38, %v2906_v31 }
 0x518   :  { %v540_v43 = vpop.f32.mrf.mxu0 }
 0x519   :  { %2533 = vtanh.f32 %v543_v41 }
 0x524   :  { %v2532_v44 = vpop.eup %2531 }
 0x525   :  { %v546_v45 = vmul.f32 %v2532_v44, %v2899_v14 }
 0x526   :  { %v2534_v59 = vpop.eup %2533 }
 0x527   :  { %v547_v62 = vmul.f32 %v2534_v59, %v2906_v31  ;;  %v548_v50 = vadd.f32 %v546_v45, %v2919_v36 }
 0x529   :  { %v549_v39 = vadd.f32 %v547_v62, %v2922_v53  ;;  %v550_v47 = vmul.f32 %v548_v50, %v485_v29 }
 0x52b   :  { %v551_v56 = vmul.f32 %v549_v39, %v548_v50 }
 0x52d   :  { %553 = vrot.lane.b32.xlu0 %v551_v56, %s2632_s24 }
 0x59f   :  { %v554_v60 = vpop.permute.xlu0 %553 }
 0x5a0   :  { %v556_v61 = vadd.f32 %v554_v60, %v550_v47 }
 0x5a2   :  { %2535 = vtanh.f32 %v556_v61 }
 0x5af   :  { %v2536_v1 = vpop.eup %2535 }
 0x5b0   :  { %v2974_v57 = vmul.f32 %v2536_v1, %v549_v39 }
 0x5b2   :  { %v565_v3 = vpack.c.bf16 %v2974_v57, %v2974_v57 }
 0x5b4   :  { %567 = vrot.lane.b32.xlu1 %v565_v3, %s2632_s24 }
 0x626   :  { %v568_v7 = vpop.permute.xlu1 %567 }
 0x627   :  { %2304 = vmatmul.mubr.msk.bf16.vlgmr.msra.gmra.mxu1 %vm156_vm2, %v568_v7 }
 0x628   :  { %723 = vmatpush1.bf16.msra.mxu1 %v2768_v18  ;;  %746 = vmatprep.mubr.bf16.mxu1 %v2630_v2 }
 0x629   :  { %724 = vmatprep.subr.bf16.mxu1 %v2775_v19 }
 0x62c   :  { %725 = vmatpush1.bf16.msra.mxu1 %v2780_v20 }
 0x62d   :  { %726 = vmatprep.subr.bf16.mxu1 %v2787_v21 }
 0x630   :  { %727 = vmatpush1.bf16.msra.mxu1 %v2793_v22 }
 0x631   :  { %728 = vmatprep.subr.bf16.mxu1 %v2800_v23 }
 0x634   :  { %729 = vmatpush1.bf16.msra.mxu1 %v2805_v24 }
 0x635   :  { %864 = vmatprep.subr.bf16.mxu1 %v2763_v17 }
 0x6e7   :  { %v606_v8 = vpop.f32.mrf.mxu1 }
 0x6e8   :  { %v607_v9 = vadd.f32 %v606_v8, %v2871_v15 }
 0x6e9   :  { %v608_v58 = vpop.f32.mrf.mxu1 }
 0x6ea   :  { %v613_v12 = vmul.f32 %v607_v9, %v2899_v14  ;;  %v609_v13 = vadd.f32 %v608_v58, %v2875_v33 }
 0x6eb   :  { %v610_v16 = vpop.f32.mrf.mxu1 }
 0x6ec   :  { %2537 = vtanh.f32 %v613_v12  ;;  %v614_v63 = vmul.f32 %v609_v13, %v2906_v31 }
 0x6ed   :  { %v611_v25 = vpop.f32.mrf.mxu1 }
 0x6ee   :  { %2539 = vtanh.f32 %v614_v63 }
 0x6f9   :  { %v2538_v10 = vpop.eup %2537 }
 0x6fa   :  { %v617_v54 = vmul.f32 %v2538_v10, %v2899_v14 }
 0x6fb   :  { %v2540_v29 = vpop.eup %2539 }
 0x6fc   :  { %v618_v17 = vmul.f32 %v2540_v29, %v2906_v31  ;;  %v619_v55 = vadd.f32 %v617_v54, %v2919_v36 }
 0x6fe   :  { %v620_v15 = vadd.f32 %v618_v17, %v2922_v53  ;;  %v621_v33 = vmul.f32 %v619_v55, %v556_v61 }
 0x700   :  { %v622_v34 = vmul.f32 %v620_v15, %v619_v55 }
 0x702   :  { %624 = vrot.lane.b32.xlu0 %v622_v34, %s2632_s24 }
 0x774   :  { %v625_v52 = vpop.permute.xlu0 %624 }
 0x775   :  { %v627_v48 = vadd.f32 %v625_v52, %v621_v33 }
 0x777   :  { %2541 = vtanh.f32 %v627_v48 }
 0x784   :  { %v2542_v6 = vpop.eup %2541 }
 0x785   :  { %v2998_v37 = vmul.f32 %v2542_v6, %v620_v15 }
 0x787   :  { %v636_v49 = vpack.c.bf16 %v2998_v37, %v2998_v37 }
 0x789   :  { %638 = vrot.lane.b32.xlu1 %v636_v49, %s2632_s24 }
 0x7fb   :  { %v639_v38 = vpop.permute.xlu1 %638 }
 0x7fc   :  { %2305 = vmatmul.mubr.msk.bf16.vlgmr.msra.gmra.mxu0 %vm156_vm2, %v639_v38 }
 0x7fd   :  { %794 = vmatpush1.bf16.msra.mxu0 %v2768_v18  ;;  %817 = vmatprep.mubr.bf16.mxu0 %v2630_v2 }
 0x7fe   :  { %795 = vmatprep.subr.bf16.mxu0 %v2775_v19 }
 0x801   :  { %796 = vmatpush1.bf16.msra.mxu0 %v2780_v20 }
 0x802   :  { %797 = vmatprep.subr.bf16.mxu0 %v2787_v21 }
 0x805   :  { %798 = vmatpush1.bf16.msra.mxu0 %v2793_v22 }
 0x806   :  { %799 = vmatprep.subr.bf16.mxu0 %v2800_v23 }
 0x809   :  { %800 = vmatpush1.bf16.msra.mxu0 %v2805_v24 }
 0x8bc   :  { %v677_v40 = vpop.f32.mrf.mxu0 }
 0x8bd   :  { %v678_v41 = vadd.f32 %v677_v40, %v2873_v27 }
 0x8be   :  { %v679_v43 = vpop.f32.mrf.mxu0 }
 0x8bf   :  { %v684_v44 = vmul.f32 %v678_v41, %v2899_v14  ;;  %v680_v45 = vadd.f32 %v679_v43, %v2877_v35 }
 0x8c0   :  { %v681_v59 = vpop.f32.mrf.mxu0 }
 0x8c1   :  { %2543 = vtanh.f32 %v684_v44  ;;  %v685_v62 = vmul.f32 %v680_v45, %v2906_v31 }
 0x8c2   :  { %v682_v50 = vpop.f32.mrf.mxu0 }
 0x8c3   :  { %2545 = vtanh.f32 %v685_v62 }
 0x8ce   :  { %v2544_v39 = vpop.eup %2543 }
 0x8cf   :  { %v688_v56 = vmul.f32 %v2544_v39, %v2899_v14 }
 0x8d0   :  { %v2546_v47 = vpop.eup %2545 }
 0x8d1   :  { %v689_v60 = vmul.f32 %v2546_v47, %v2906_v31  ;;  %v690_v61 = vadd.f32 %v688_v56, %v2919_v36 }
 0x8d3   :  { %v691_v27 = vadd.f32 %v689_v60, %v2922_v53  ;;  %v692_v35 = vmul.f32 %v690_v61, %v627_v48 }
 0x8d5   :  { %v693_v1 = vmul.f32 %v691_v27, %v690_v61 }
 0x8d7   :  { %695 = vrot.lane.b32.xlu0 %v693_v1, %s2632_s24 }
 0x949   :  { %v696_v3 = vpop.permute.xlu0 %695 }
 0x94a   :  { %v698_v7 = vadd.f32 %v696_v3, %v692_v35  ;;  %v2511_v35 = vld [vmem:[%s3533_s4 + $0x18] sm:$0xff]   ;;  %v2512_v3 = vld [vmem:[%s3533_s4 + $0x10] sm:$0xff]  }
 0x94c   :  { %2547 = vtanh.f32 %v698_v7 }
 0x959   :  { %v2548_v8 = vpop.eup %2547 }
 0x95a   :  { %v3021_v9 = vmul.f32 %v2548_v8, %v691_v27 }
 0x95c   :  { %v707_v58 = vpack.c.bf16 %v3021_v9, %v3021_v9 }
 0x95e   :  { %709 = vrot.lane.b32.xlu1 %v707_v58, %s2632_s24 }
 0x9d0   :  { %v710_v12 = vpop.permute.xlu1 %709 }
 0x9d1   :  { %2306 = vmatmul.mubr.msk.bf16.vlgmr.msra.gmra.mxu1 %vm156_vm2, %v710_v12 }
 0x9d2   :  { %865 = vmatpush1.bf16.msra.mxu1 %v2768_v18  ;;  %888 = vmatprep.mubr.bf16.mxu1 %v2630_v2 }
 0x9d3   :  { %866 = vmatprep.subr.bf16.mxu1 %v2775_v19 }
 0x9d6   :  { %867 = vmatpush1.bf16.msra.mxu1 %v2780_v20 }
 0x9d7   :  { %868 = vmatprep.subr.bf16.mxu1 %v2787_v21 }
 0x9da   :  { %869 = vmatpush1.bf16.msra.mxu1 %v2793_v22 }
 0x9db   :  { %870 = vmatprep.subr.bf16.mxu1 %v2800_v23 }
 0x9de   :  { %871 = vmatpush1.bf16.msra.mxu1 %v2805_v24 }
 0x9df   :  { %2404 = vmatprep.subr.bf16.mxu1 %v2511_v35 }
 0xa91   :  { %v748_v13 = vpop.f32.mrf.mxu1 }
 0xa92   :  { %v749_v16 = vadd.f32 %v748_v13, %v2881_v42 }
 0xa93   :  { %v750_v63 = vpop.f32.mrf.mxu1 }
 0xa94   :  { %v755_v18 = vmul.f32 %v749_v16, %v2899_v14  ;;  %v751_v2 = vadd.f32 %v750_v63, %v2885_v51 }
 0xa95   :  { %v752_v25 = vpop.f32.mrf.mxu1 }
 0xa96   :  { %2549 = vtanh.f32 %v755_v18  ;;  %v756_v19 = vmul.f32 %v751_v2, %v2906_v31  ;;  %v2513_v2 = vld [vmem:[%s3533_s4 + $0x8] sm:$0xff]  }
 0xa97   :  { %v753_v20 = vpop.f32.mrf.mxu1 }
 0xa98   :  { %2551 = vtanh.f32 %v756_v19 }
 0xaa3   :  { %v2550_v21 = vpop.eup %2549 }
 0xaa4   :  { %v759_v22 = vmul.f32 %v2550_v21, %v2899_v14 }
 0xaa5   :  { %v2552_v23 = vpop.eup %2551 }
 0xaa6   :  { %v760_v24 = vmul.f32 %v2552_v23, %v2906_v31  ;;  %v761_v10 = vadd.f32 %v759_v22, %v2919_v36 }
 0xaa8   :  { %v762_v42 = vadd.f32 %v760_v24, %v2922_v53  ;;  %v763_v51 = vmul.f32 %v761_v10, %v698_v7  ;;  %v914_v24 = vpack.c.bf16 %v2950_v0, %v2928_v46 }
 0xaaa   :  { %v764_v54 = vmul.f32 %v762_v42, %v761_v10  ;;  %v2515_v10 = vld [vmem:[%s3534_s5 + $0x18] sm:$0xff]  }
 0xaab   :  { %2388 = vmatprep.subr.bf16.mxu0 %v2515_v10 }
 0xaac   :  { %766 = vrot.lane.b32.xlu0 %v764_v54, %s2632_s24 }
 0xb1e   :  { %v767_v29 = vpop.permute.xlu0 %766 }
 0xb1f   :  { %v769_v17 = vadd.f32 %v767_v29, %v763_v51  ;;  %v2518_v51 = vld [vmem:[%s3534_s5] sm:$0xff]  }
 0xb21   :  { %2553 = vtanh.f32 %v769_v17 }
 0xb2e   :  { %v2554_v55 = vpop.eup %2553 }
 0xb2f   :  { %v3044_v15 = vmul.f32 %v2554_v55, %v762_v42 }
 0xb31   :  { %v778_v34 = vpack.c.bf16 %v3044_v15, %v3044_v15 }
 0xb33   :  { %780 = vrot.lane.b32.xlu1 %v778_v34, %s2632_s24 }
 0xba5   :  { %v781_v33 = vpop.permute.xlu1 %780 }
 0xba6   :  { %2307 = vmatmul.mubr.msk.bf16.vlgmr.msra.gmra.mxu0 %vm156_vm2, %v781_v33  ;;  %v919_v33 = vpack.c.bf16 %v3021_v9, %v3044_v15 }
 0xba7   :  { %2389 = vmatpush3.bf16.msra.mxu0 %v2515_v10 }
 0xc66   :  { %v819_v52 = vpop.f32.mrf.mxu0 }
 0xc67   :  { %v820_v48 = vadd.f32 %v819_v52, %v2892_v5 }
 0xc68   :  { %v821_v6 = vpop.f32.mrf.mxu0 }
 0xc69   :  { %v826_v49 = vmul.f32 %v820_v48, %v2899_v14  ;;  %v822_v38 = vadd.f32 %v821_v6, %v2896_v11 }
 0xc6a   :  { %v823_v40 = vpop.f32.mrf.mxu0 }
 0xc6b   :  { %2555 = vtanh.f32 %v826_v49  ;;  %v827_v41 = vmul.f32 %v822_v38, %v2906_v31 }
 0xc6c   :  { %v824_v43 = vpop.f32.mrf.mxu0 }
 0xc6d   :  { %2557 = vtanh.f32 %v827_v41 }
 0xc78   :  { %v2556_v44 = vpop.eup %2555 }
 0xc79   :  { %v830_v45 = vmul.f32 %v2556_v44, %v2899_v14 }
 0xc7a   :  { %v2558_v59 = vpop.eup %2557 }
 0xc7b   :  { %v831_v62 = vmul.f32 %v2558_v59, %v2906_v31  ;;  %v832_v50 = vadd.f32 %v830_v45, %v2919_v36  ;;  %v3139_v45 = vld [vmem:[%s3535_s6] ss:$0 sm:$0xff] }
 0xc7c   :  { %v3144_v59 = vld [vmem:[%s3537_s8] ss:$0 sm:$0xff] }
 0xc7d   :  { %v833_v5 = vadd.f32 %v831_v62, %v2922_v53  ;;  %v834_v11 = vmul.f32 %v832_v50, %v769_v17 }
 0xc7f   :  { %v835_v39 = vmul.f32 %v833_v5, %v832_v50  ;;  %v3152_v50 = vld [vmem:[%s3536_s7] sm:$0xff] }
 0xc81   :  { %837 = vrot.lane.b32.xlu0 %v835_v39, %s2632_s24  ;;  %v1183_v39 = vsel %vm1182_vm10, %v3152_v50, -inf }
 0xcf3   :  { %v838_v56 = vpop.permute.xlu0 %837 }
 0xcf4   :  { %v840_v47 = vadd.f32 %v838_v56, %v834_v11  ;;  %v1184_v11 = vrot.slane %v1183_v39, 4 }
 0xcf6   :  { %2559 = vtanh.f32 %v840_v47 }
 0xd03   :  { %v2560_v60 = vpop.eup %2559 }
 0xd04   :  { %v3059_v61 = vmul.f32 %v2560_v60, %v833_v5 }
 0xd06   :  { %v849_v27 = vpack.c.bf16 %v3059_v61, %v3059_v61 }
 0xd08   :  { %851 = vrot.lane.b32.xlu1 %v849_v27, %s2632_s24 }
 0xd7a   :  { %v852_v1 = vpop.permute.xlu1 %851 }
 0xd7b   :  { %2308 = vmatmul.mubr.msk.bf16.vlgmr.msra.gmra.mxu1 %vm156_vm2, %v852_v1 }
 0xd7c   :  { %2405 = vmatpush3.bf16.msra.mxu1 %v2511_v35 }
 0xd7d   :  { %2406 = vmatprep.subr.bf16.mxu1 %v2512_v3 }
 0xd80   :  { %2407 = vmatpush3.bf16.msra.mxu1 %v2512_v3 }
 0xd81   :  { %2408 = vmatprep.subr.bf16.mxu1 %v2513_v2 }
 0xd84   :  { %2409 = vmatpush3.bf16.msra.mxu1 %v2513_v2 }
 0xe3b   :  { %v890_v7 = vpop.f32.mrf.mxu1 }
 0xe3c   :  { %v891_v8 = vadd.f32 %v890_v7, %v2902_v28  ;;  %v2514_v28 = vld [vmem:[%s3533_s4] sm:$0xff]  }
 0xe3d   :  { %v892_v58 = vpop.f32.mrf.mxu1  ;;  %2410 = vmatprep.subr.bf16.mxu1 %v2514_v28 }
 0xe3e   :  { %v897_v12 = vmul.f32 %v891_v8, %v2899_v14  ;;  %v893_v13 = vadd.f32 %v892_v58, %v2909_v32  ;;  %2411 = vmatpush3.bf16.msra.mxu1 %v2514_v28  ;;  %v2601_v8 = vld [vmem:[%s3529_s0 + $0x10] sm:$0xff]  ;;  %v916_v58 = vpack.c.bf16 %v3044_v15, %v3021_v9 }
 0xe3f   :  { %v894_v16 = vpop.f32.mrf.mxu1  ;;  %2425 = vmatprep.subr.mxu1 %v2631_v30  ;;  %vm244_vm11 = vcmp.ne.s32.totalorder %v2601_v8, 0 }
 0xe40   :  { %2561 = vtanh.f32 %v897_v12  ;;  %v898_v63 = vmul.f32 %v893_v13, %v2906_v31  ;;  %v3170_v12 = vsel %vm244_vm11, 1.0, %v2631_v30 }
 0xe41   :  { %v895_v18 = vpop.f32.mrf.mxu1  ;;  %v1388_v13 = vsub.f32 1.0, %v3170_v12 }
 0xe42   :  { %2563 = vtanh.f32 %v898_v63 }
 0xe4d   :  { %v2562_v25 = vpop.eup %2561 }
 0xe4e   :  { %v901_v19 = vmul.f32 %v2562_v25, %v2899_v14  ;;  %v915_v14 = vpack.c.bf16 %v2998_v37, %v2974_v57 }
 0xe4f   :  { %v2564_v32 = vpop.eup %2563 }
 0xe50   :  { %v902_v20 = vmul.f32 %v2564_v32, %v2906_v31  ;;  %v903_v21 = vadd.f32 %v901_v19, %v2919_v36  ;;  %v920_v31 = vpack.c.bf16 %v2974_v57, %v2998_v37  ;;  %v921_v36 = vpack.c.bf16 %v2928_v46, %v2950_v0  ;;  %v2516_v57 = vld [vmem:[%s3534_s5 + $0x10] sm:$0xff]   ;;  %v2517_v46 = vld [vmem:[%s3534_s5 + $0x8] sm:$0xff]  }
 0xe51   :  { %2390 = vmatprep.subr.bf16.mxu0 %v2516_v57 }
 0xe52   :  { %v904_v22 = vadd.f32 %v902_v20, %v2922_v53  ;;  %v3101_v53 = vsel %vm243_vm9, 1.0, %v2631_v30  ;;  %2391 = vmatpush3.bf16.msra.mxu0 %v2516_v57  ;;  %v905_v0 = vmul.f32 %v903_v21, %v840_v47  ;;  %v1185_v47 = vmax.f32 %v1183_v39, %v1184_v11 }
 0xe53   :  { %v1290_v4 = vsub.f32 1.0, %v3101_v53  ;;  %2392 = vmatprep.subr.bf16.mxu0 %v2517_v46 }
 0xe54   :  { %v906_v23 = vmul.f32 %v904_v22, %v903_v21  ;;  %v1186_v60 = vrot.slane %v1185_v47, 2 }
 0xe56   :  { %908 = vrot.lane.b32.xlu0 %v906_v23, %s2632_s24  ;;  %2393 = vmatpush3.bf16.msra.mxu0 %v2517_v46  ;;  %v1187_v27 = vmax.f32 %v1185_v47, %v1186_v60 }
 0xe57   :  { %2394 = vmatprep.subr.bf16.mxu0 %v2518_v51 }
 0xe58   :  { %v1188_v1 = vrot.slane %v1187_v27, 1 }
 0xe5a   :  { %1055 = vrot.lane.b32.xlu0 %v914_v24, %s2632_s24  ;;  %2395 = vmatpush3.bf16.msra.mxu0 %v2518_v51  ;;  %v3159_v35 = vmax.f32 %v1187_v27, %v1188_v1 }
 0xe5b   :  { %2420 = vmatprep.subr.mxu0 %v2631_v30 }
 0xe5c   :  { %v1190_v3 = vsub.f32 %v3152_v50, %v3159_v35 }
 0xe5e   :  { %1057 = vrot.lane.b32.xlu0 %v915_v14, %s2632_s24  ;;  %v1191_v7 = vmul.f32 1.442695, %v1190_v3 }
 0xe62   :  { %946 = vrot.lane.b32.xlu0 %v920_v31, %s2632_s24 }
 0xe66   :  { %948 = vrot.lane.b32.xlu0 %v921_v36, %s2632_s24 }
 0xe6a   :  { %1286 = vperm.xlu0 %2485, %v3101_v53  }
 0xe6e   :  { %1293 = vperm.xlu0 %2485, %v1290_v4  }
 0xec8   :  { %v909_v37 = vpop.permute.xlu0 %908 }
 0xec9   :  { %v911_v42 = vadd.f32 %v909_v37, %v905_v0 }
 0xecb   :  { %2565 = vtanh.f32 %v911_v42 }
 0xecc   :  { %v1056_v54 = vpop.permute.xlu0 %1055  ;;  %2567 = vpow2.f32 %v1191_v7 }
 0xecd   :  { %2412 = vmatprep.mubr.msk.bf16.mxu1 %vm156_vm2, %v1056_v54 }
 0xed0   :  { %v1058_v29 = vpop.permute.xlu0 %1057 }
 0xed1   :  { %2413 = vmatmul.mubr.msk.bf16.vlgmr.msra.gmra.mxu1 %vm156_vm2, %v1058_v29 }
 0xed4   :  { %v947_v6 = vpop.permute.xlu0 %946 }
 0xed8   :  { %v2566_v17 = vpop.eup %2565  ;;  %v949_v49 = vpop.permute.xlu0 %948 }
 0xed9   :  { %v3120_v55 = vmul.f32 %v2566_v17, %v904_v22  ;;  %v3176_v16 = vpop.eup %2567 }
 0xeda   :  { %2426 = vmatpush3.msra.mxu1 %v3176_v16 }
 0xedb   :  { %v918_v34 = vpack.c.bf16 %v3059_v61, %v3120_v55  ;;  %2435 = vmatprep.subr.mxu1 %v2631_v30 }
 0xedd   :  { %942 = vrot.lane.b32.xlu1 %v918_v34, %s2632_s24  ;;  %v2602_v34 = vld [vmem:[%s3529_s0 + $0x18] sm:$0xff] }
 0xede   :  { %vm245_vm13 = vcmp.ne.s32.totalorder %v2602_v34, 0 }
 0xee1   :  { %944 = vrot.lane.b32.xlu1 %v919_v33, %s2632_s24  ;;  %v917_v33 = vpack.c.bf16 %v3120_v55, %v3059_v61 }
 0xee5   :  { %v1287_v57 = vpop.permute.xlu0 %1286 }
 0xee9   :  { %v1294_v42 = vpop.permute.xlu0 %1293 }
 0xf4f   :  { %v943_v52 = vpop.permute.xlu1 %942 }
 0xf50   :  { %2396 = vmatprep.mubr.msk.bf16.mxu0 %vm156_vm2, %v943_v52  ;;  %v3213_v52 = vsel %vm245_vm13, 1.0, %v2631_v30 }
 0xf53   :  { %v945_v48 = vpop.permute.xlu1 %944 }
 0xf54   :  { %2397 = vmatmul.mubr.msk.bf16.vlgmr.msra.gmra.mxu0 %vm156_vm2, %v945_v48  ;;  %v1486_v48 = vsub.f32 1.0, %v3213_v52 }
 0xf55   :  { %2400 = vmatprep.mubr.msk.bf16.mxu0 %vm156_vm2, %v947_v6  ;;  %2421 = vmatpush3.msra.mxu0 %v3176_v16 }
 0xf56   :  { %2430 = vmatprep.subr.mxu0 %v2631_v30 }
 0xf5c   :  { %2401 = vmatmul.mubr.msk.bf16.gmra.mxu0 %vm156_vm2, %v949_v49 }
 0xf5d   :  { %2422 = vmatprep.mubr.msk.f32.mxu0 %vm2633_vm12, %v2631_v30 }
 0xf91   :  { %v3132_v38 = vpop.f32.mrf.mxu1 }
 0xf93   :  { %v1133_v41 = vpop.f32.mrf.mxu1 }
 0xf95   :  { %v3198_v24 = vpop.f32.mrf.mxu1 }
 0xf97   :  { %v1136_v31 = vpop.f32.mrf.mxu1 }
0x1014   :  { %v3134_v40 = vpop.f32.mrf.mxu0 }
0x1015   :  { %v1142_v60 = vadd.f32 %v3132_v38, %v3134_v40  ;;  %v2603_v38 = vld [vmem:[%s3529_s0 + $0x20] sm:$0xff] }
0x1016   :  { %v1020_v43 = vpop.f32.mrf.mxu0  ;;  %vm246_vm14 = vcmp.ne.s32.totalorder %v2603_v38, 0 }
0x1017   :  { %v1134_v44 = vadd.f32 %v1133_v41, %v1020_v43  ;;  %v3236_v7 = vadd.f32 %v3139_v45, %v1142_v60  ;;  %v3245_v40 = vsel %vm246_vm14, 1.0, %v2631_v30 }
0x1018   :  { %v3188_v28 = vpop.f32.mrf.mxu0 }
0x1019   :  { %v3147_v62 = vadd.f32 %v3139_v45, %v1134_v44 }
0x101a   :  { %v1023_v25 = vpop.f32.mrf.mxu0 }
0x101b   :  { %v1199_v5 = vadd.f32 %v3144_v59, %v3147_v62  ;;  %v1137_v36 = vadd.f32 %v1136_v31, %v1023_v25 }
0x101c   :  { %v3190_v19 = vpop.f32.mrf.mxu0 }
0x101d   :  { %v1200_v56 = vsel %vm1182_vm10, %v1199_v5, -inf  ;;  %v3201_v46 = vadd.f32 %v3139_v45, %v1137_v36  ;;  %v1296_v51 = vmul.f32 %v1294_v42, %v1199_v5 }
0x101e   :  { %1201 = vmax.xlane.f32.xlu1 %v1200_v56  ;;  %v3192_v32 = vpop.f32.mrf.mxu0 }
0x1020   :  { %v3194_v20 = vpop.f32.mrf.mxu0 }
0x1022   :  { %v3196_v21 = vpop.f32.mrf.mxu0 }
0x102f   :  { %1059 = vrot.lane.b32.xlu1 %v916_v58, %s2632_s24 }
0x1033   :  { %1384 = vperm.xlu1 %2486, %v3170_v12  }
0x1037   :  { %1391 = vperm.xlu1 %2486, %v1388_v13  }
0x10a7   :  { %v1202_v9 = vpop.xlane.xlu1 %1201 }
0x10a8   :  { %v1203_v15 = vsub.f32 %v1199_v5, %v1202_v9 }
0x10aa   :  { %v1204_v63 = vmul.f32 1.442695, %v1203_v15 }
0x10ab   :  { %v1060_v18 = vpop.permute.xlu1 %1059 }
0x10ac   :  { %2569 = vpow2.f32 %v1204_v63  ;;  %2416 = vmatprep.mubr.msk.bf16.mxu1 %vm156_vm2, %v1060_v18 }
0x10af   :  { %v1385_v1 = vpop.permute.xlu1 %1384 }
0x10b3   :  { %v1392_v13 = vpop.permute.xlu1 %1391 }
0x10b9   :  { %v2570_v2 = vpop.eup %2569 }
0x10ba   :  { %2423 = vmatmul.mubr.msk.f32.vlgmr.msra.gmra.mxu0 %vm1182_vm10, %v2570_v2 }
0x10bb   :  { %2431 = vmatpush3.msra.mxu0 %v3176_v16  ;;  %2432 = vmatprep.mubr.msk.f32.mxu0 %vm2633_vm12, %v2631_v30 }
0x10bc   :  { %2440 = vmatprep.subr.mxu0 %v2631_v30 }
0x117a   :  { %v1275_v22 = vpop.f32.mrf.mxu0 }
0x117b   :  { %2571 = vlog2.f32 %v1275_v22 }
0x117c   :  { %v2424_v23 = vpop.f32.mrf.mxu0 }
0x1188   :  { %v2572_v14 = vpop.eup %2571 }
0x1189   :  { %v1280_v10 = vmul.f32 0.6931472, %v2572_v14 }
0x118b   :  { %v1281_v4 = vadd.f32 %v1280_v10, %v1202_v9  ;;  %v1145_v10 = vadd.f32 %v3198_v24, %v3188_v28  ;;  %v2604_v28 = vld [vmem:[%s3529_s0 + $0x28] sm:$0xff] }
0x118c   :  { %vm247_vm15 = vcmp.ne.s32.totalorder %v2604_v28, 0  ;;  %v1907_v28 = vld [vmem:[%s3530_s1 + $0x10] sm:$0xff] }
0x118d   :  { %v1282_v0 = vadd.f32 %v1281_v4, %v3159_v35  ;;  %v3266_v24 = vsel %vm247_vm15, 1.0, %v2631_v30 }
0x118f   :  { %v1283_v37 = vadd.f32 %v1282_v0, %v3201_v46 }
0x1191   :  { %v1289_v54 = vmul.f32 %v1287_v57, %v1283_v37  ;;  %v3256_v37 = vadd.f32 %v3139_v45, %v1145_v10 }
0x1193   :  { %v1297_v29 = vadd.f32 %v1296_v51, %v1289_v54 }
0x1195   :  { %v1298_v17 = vsel %vm1182_vm10, %v1297_v29, -inf  ;;  %v1394_v15 = vmul.f32 %v1392_v13, %v1297_v29 }
0x1196   :  { %1299 = vmax.xlane.f32.xlu0 %v1298_v17 }
0x11ac   :  { %1061 = vrot.lane.b32.xlu0 %v917_v33, %s2632_s24 }
0x11b0   :  { %1482 = vperm.xlu0 %2485, %v3213_v52  }
0x11b4   :  { %1489 = vperm.xlu0 %2485, %v1486_v48   ;;  %v1584_v48 = vsub.f32 1.0, %v3245_v40 }
0x121f   :  { %v1300_v6 = vpop.xlane.xlu0 %1299 }
0x1220   :  { %v1301_v49 = vsub.f32 %v1297_v29, %v1300_v6 }
0x1222   :  { %v1302_v41 = vmul.f32 1.442695, %v1301_v49 }
0x1223   :  { %v1062_v43 = vpop.permute.xlu0 %1061 }
0x1224   :  { %2573 = vpow2.f32 %v1302_v41  ;;  %2417 = vmatmul.mubr.msk.bf16.gmra.mxu1 %vm156_vm2, %v1062_v43 }
0x1225   :  { %2427 = vmatprep.mubr.msk.f32.mxu1 %vm2633_vm12, %v2631_v30 }
0x122b   :  { %v1483_v4 = vpop.permute.xlu0 %1482 }
0x122f   :  { %v1490_v51 = vpop.permute.xlu0 %1489 }
0x1231   :  { %v2574_v61 = vpop.eup %2573 }
0x1232   :  { %2428 = vmatmul.mubr.msk.f32.vlgmr.msra.gmra.mxu1 %vm1182_vm10, %v2574_v61 }
0x1233   :  { %2436 = vmatpush3.msra.mxu1 %v3176_v16  ;;  %2437 = vmatprep.mubr.msk.f32.mxu1 %vm2633_vm12, %v2631_v30 }
0x1234   :  { %2445 = vmatprep.subr.mxu1 %v2631_v30 }
0x12e4   :  { %v3225_v55 = vpop.f32.mrf.mxu1 }
0x12e6   :  { %v3227_v44 = vpop.f32.mrf.mxu1 }
0x12e7   :  { %v1150_v60 = vadd.f32 %v3227_v44, %v3192_v32  ;;  %v2605_v32 = vld [vmem:[%s3529_s0 + $0x30] sm:$0xff] }
0x12e8   :  { %v3229_v5 = vpop.f32.mrf.mxu1  ;;  %vm248_vm0 = vcmp.ne.s32.totalorder %v2605_v32, 0 }
0x12e9   :  { %v3287_v44 = vsel %vm248_vm0, 1.0, %v2631_v30 }
0x12ea   :  { %v3231_v39 = vpop.f32.mrf.mxu1 }
0x12f2   :  { %v1373_v11 = vpop.f32.mrf.mxu1 }
0x12f3   :  { %2575 = vlog2.f32 %v1373_v11 }
0x12f4   :  { %v2429_v56 = vpop.f32.mrf.mxu1 }
0x1300   :  { %v2576_v47 = vpop.eup %2575 }
0x1301   :  { %v1378_v27 = vmul.f32 0.6931472, %v2576_v47 }
0x1303   :  { %v1379_v3 = vadd.f32 %v1378_v27, %v1300_v6  ;;  %v1682_v6 = vsub.f32 1.0, %v3266_v24 }
0x1305   :  { %v1380_v8 = vadd.f32 %v1379_v3, %v3159_v35  ;;  %v3278_v3 = vadd.f32 %v3139_v45, %v1150_v60 }
0x1307   :  { %v1381_v58 = vadd.f32 %v1380_v8, %v3236_v7 }
0x1309   :  { %v1387_v9 = vmul.f32 %v1385_v1, %v1381_v58 }
0x130b   :  { %v1395_v63 = vadd.f32 %v1394_v15, %v1387_v9 }
0x130d   :  { %v1396_v18 = vsel %vm1182_vm10, %v1395_v63, -inf  ;;  %v1492_v17 = vmul.f32 %v1490_v51, %v1395_v63 }
0x130e   :  { %1397 = vmax.xlane.f32.xlu1 %v1396_v18 }
0x131f   :  { %1580 = vperm.xlu1 %2486, %v3245_v40  }
0x1397   :  { %v1398_v2 = vpop.xlane.xlu1 %1397 }
0x1398   :  { %v1399_v25 = vsub.f32 %v1395_v63, %v1398_v2 }
0x139a   :  { %v1400_v22 = vmul.f32 1.442695, %v1399_v25 }
0x139b   :  { %v1581_v9 = vpop.permute.xlu1 %1580 }
0x139c   :  { %2577 = vpow2.f32 %v1400_v22 }
0x13a9   :  { %v2578_v23 = vpop.eup %2577 }
0x13aa   :  { %2433 = vmatmul.mubr.msk.f32.vlgmr.msra.gmra.mxu0 %vm1182_vm10, %v2578_v23 }
0x13ab   :  { %2441 = vmatpush3.msra.mxu0 %v3176_v16  ;;  %2442 = vmatprep.mubr.msk.f32.mxu0 %vm2633_vm12, %v2631_v30 }
0x13ac   :  { %2450 = vmatprep.subr.mxu0 %v2631_v30 }
0x146a   :  { %v1471_v14 = vpop.f32.mrf.mxu0 }
0x146b   :  { %2579 = vlog2.f32 %v1471_v14 }
0x146c   :  { %v2434_v31 = vpop.f32.mrf.mxu0 }
0x1478   :  { %v2580_v36 = vpop.eup %2579 }
0x1479   :  { %v1476_v57 = vmul.f32 0.6931472, %v2580_v36 }
0x147b   :  { %v1477_v0 = vadd.f32 %v1476_v57, %v1398_v2  ;;  %v1780_v2 = vsub.f32 1.0, %v3287_v44  ;;  %v1153_v57 = vadd.f32 %v3231_v39, %v3196_v21  ;;  %v1905_v21 = vld [vmem:[%s3530_s1] sm:$0xff]  ;;  %v1906_v39 = vld [vmem:[%s3530_s1 + $0x8] sm:$0xff] }
0x147d   :  { %v1478_v42 = vadd.f32 %v1477_v0, %v3159_v35 }
0x147f   :  { %v1479_v54 = vadd.f32 %v1478_v42, %v3256_v37 }
0x1481   :  { %v1485_v29 = vmul.f32 %v1483_v4, %v1479_v54  ;;  %v3299_v54 = vadd.f32 %v3139_v45, %v1153_v57 }
0x1483   :  { %v1493_v34 = vadd.f32 %v1492_v17, %v1485_v29 }
0x1485   :  { %v1494_v33 = vsel %vm1182_vm10, %v1493_v34, -inf }
0x1486   :  { %1495 = vmax.xlane.f32.xlu0 %v1494_v33 }
0x149c   :  { %1587 = vperm.xlu0 %2485, %v1584_v48  }
0x14a0   :  { %1678 = vperm.xlu0 %2485, %v3266_v24  }
0x14a4   :  { %1685 = vperm.xlu0 %2485, %v1682_v6   ;;  %v1908_v6 = vld [vmem:[%s3530_s1 + $0x18] sm:$0xff] }
0x150f   :  { %v1496_v49 = vpop.xlane.xlu0 %1495 }
0x1510   :  { %v1497_v41 = vsub.f32 %v1493_v34, %v1496_v49 }
0x1512   :  { %v1498_v43 = vmul.f32 1.442695, %v1497_v41  ;;  %v1911_v41 = vld [vmem:[%s3530_s1 + $0x30] sm:$0xff] }
0x1514   :  { %2581 = vpow2.f32 %v1498_v43  ;;  %v2606_v43 = vld [vmem:[%s3529_s0 + $0x38] sm:$0xff] }
0x1515   :  { %vm249_vm1 = vcmp.ne.s32.totalorder %v2606_v43, 0 }
0x1517   :  { %v1588_v58 = vpop.permute.xlu0 %1587 }
0x1518   :  { %v1590_v15 = vmul.f32 %v1588_v58, %v1493_v34 }
0x151b   :  { %v1679_v0 = vpop.permute.xlu0 %1678 }
0x151f   :  { %v1686_v29 = vpop.permute.xlu0 %1685 }
0x1521   :  { %v2582_v61 = vpop.eup %2581 }
0x1522   :  { %2438 = vmatmul.mubr.msk.f32.vlgmr.msra.gmra.mxu1 %vm1182_vm10, %v2582_v61  ;;  %v3326_v61 = vsel %vm249_vm1, 1.0, %v2631_v30 }
0x1523   :  { %2446 = vmatpush3.msra.mxu1 %v3176_v16  ;;  %2447 = vmatprep.mubr.msk.f32.mxu1 %vm2633_vm12, %v2631_v30 }
0x1524   :  { %2478 = vmatprep.subr.mxu1 %v2631_v30 }
0x15e2   :  { %v1569_v11 = vpop.f32.mrf.mxu1 }
0x15e3   :  { %2583 = vlog2.f32 %v1569_v11  ;;  %v1878_v11 = vsub.f32 1.0, %v3326_v61 }
0x15e4   :  { %v2439_v56 = vpop.f32.mrf.mxu1 }
0x15f0   :  { %v2584_v47 = vpop.eup %2583 }
0x15f1   :  { %v1574_v27 = vmul.f32 0.6931472, %v2584_v47 }
0x15f3   :  { %v1575_v1 = vadd.f32 %v1574_v27, %v1496_v49  ;;  %v1909_v49 = vld [vmem:[%s3530_s1 + $0x20] sm:$0xff] }
0x15f5   :  { %v1576_v8 = vadd.f32 %v1575_v1, %v3159_v35 }
0x15f7   :  { %v1577_v13 = vadd.f32 %v1576_v8, %v3278_v3 }
0x15f9   :  { %v1583_v63 = vmul.f32 %v1581_v9, %v1577_v13 }
0x15fb   :  { %v1591_v18 = vadd.f32 %v1590_v15, %v1583_v63 }
0x15fd   :  { %v1592_v38 = vsel %vm1182_vm10, %v1591_v18, -inf  ;;  %v1688_v34 = vmul.f32 %v1686_v29, %v1591_v18 }
0x15fe   :  { %1593 = vmax.xlane.f32.xlu1 %v1592_v38 }
0x160f   :  { %1776 = vperm.xlu1 %2486, %v3287_v44  }
0x1613   :  { %1783 = vperm.xlu1 %2486, %v1780_v2  }
0x1687   :  { %v1594_v25 = vpop.xlane.xlu1 %1593 }
0x1688   :  { %v1595_v22 = vsub.f32 %v1591_v18, %v1594_v25 }
0x168a   :  { %v1596_v23 = vmul.f32 1.442695, %v1595_v22 }
0x168c   :  { %2585 = vpow2.f32 %v1596_v23 }
0x1699   :  { %v2586_v14 = vpop.eup %2585 }
0x169a   :  { %2443 = vmatmul.mubr.msk.f32.vlgmr.msra.gmra.mxu0 %vm1182_vm10, %v2586_v14  ;;  %v1158_v14 = vadd.f32 %v3225_v55, %v3190_v19  ;;  %v2607_v19 = vld [vmem:[%s3529_s0] sm:$0xff] }
0x169b   :  { %2451 = vmatpush3.msra.mxu0 %v3176_v16  ;;  %2452 = vmatprep.mubr.msk.f32.mxu0 %vm2633_vm12, %v2631_v30  ;;  %vm242_vm4 = vcmp.ne.s32.totalorder %v2607_v19, 0 }
0x169c   :  { %2455 = vmatprep.subr.mxu0 %v2631_v30  ;;  %v1177_v57 = vadd.f32 %v3139_v45, %v1158_v14  ;;  %v3370_v55 = vsel %vm242_vm4, 1.0, %v2631_v30 }
0x175a   :  { %v1667_v31 = vpop.f32.mrf.mxu0 }
0x175b   :  { %2587 = vlog2.f32 %v1667_v31 }
0x175c   :  { %v2444_v36 = vpop.f32.mrf.mxu0 }
0x175d   :  { %v1777_v36 = vpop.permute.xlu1 %1776 }
0x1768   :  { %v2588_v10 = vpop.eup %2587 }
0x1769   :  { %v1672_v4 = vmul.f32 0.6931472, %v2588_v10 }
0x176b   :  { %v1673_v42 = vadd.f32 %v1672_v4, %v1594_v25 }
0x176d   :  { %v1674_v16 = vadd.f32 %v1673_v42, %v3159_v35  ;;  %v1784_v42 = vpop.permute.xlu1 %1783 }
0x176f   :  { %v1675_v51 = vadd.f32 %v1674_v16, %v3299_v54 }
0x1771   :  { %v1681_v17 = vmul.f32 %v1679_v0, %v1675_v51 }
0x1773   :  { %v1689_v33 = vadd.f32 %v1688_v34, %v1681_v17  ;;  %v1910_v34 = vld [vmem:[%s3530_s1 + $0x28] sm:$0xff] }
0x1775   :  { %v1690_v48 = vsel %vm1182_vm10, %v1689_v33, -inf  ;;  %v1786_v51 = vmul.f32 %v1784_v42, %v1689_v33 }
0x1776   :  { %1691 = vmax.xlane.f32.xlu0 %v1690_v48  ;;  %v2158_v48 = vsub.f32 %v3101_v53, %v3170_v12 }
0x178c   :  { %1914 = vperm.xlu0 %2485, %v1905_v21   ;;  %v2170_v21 = vsub.f32 %v3170_v12, %v3213_v52 }
0x1790   :  { %1917 = vperm.xlu0 %2485, %v1906_v39   ;;  %v2182_v39 = vsub.f32 %v3213_v52, %v3245_v40 }
0x1794   :  { %1920 = vperm.xlu0 %2485, %v1907_v28   ;;  %v2194_v28 = vsub.f32 %v3245_v40, %v3266_v24 }
0x1798   :  { %1923 = vperm.xlu0 %2485, %v1908_v6   ;;  %v1912_v6 = vld [vmem:[%s3530_s1 + $0x38] sm:$0xff] }
0x179c   :  { %1926 = vperm.xlu0 %2485, %v1909_v49   ;;  %v2206_v49 = vsub.f32 %v3266_v24, %v3287_v44 }
0x17a0   :  { %1932 = vperm.xlu0 %2485, %v1911_v41   ;;  %v2218_v41 = vsub.f32 %v3287_v44, %v3326_v61 }
0x17a4   :  { %1874 = vperm.xlu0 %2485, %v3326_v61  }
0x17a8   :  { %1881 = vperm.xlu0 %2485, %v1878_v11  }
0x17ff   :  { %v1692_v56 = vpop.xlane.xlu0 %1691 }
0x1800   :  { %v1693_v47 = vsub.f32 %v1689_v33, %v1692_v56  ;;  %v2146_v33 = vsub.f32 %v3370_v55, %v3101_v53 }
0x1802   :  { %v1694_v60 = vmul.f32 1.442695, %v1693_v47 }
0x1804   :  { %2589 = vpow2.f32 %v1694_v60 }
0x1807   :  { %v1915_v27 = vpop.permute.xlu0 %1914 }
0x1808   :  { %vm1937_vm5 = vcmp.eq.s32.totalorder %v2820_v26, %v1915_v27 }
0x1809   :  { %v3394_v43 = vsel %vm1937_vm5, 1.0, %v2631_v30 }
0x180a   :  { %v1961_v11 = vmul.f32 %v3394_v43, %v3147_v62 }
0x180b   :  { %v3330_v1 = vpop.permute.xlu0 %1917 }
0x180c   :  { %vm1938_vm8 = vcmp.eq.s32.totalorder %v2820_v26, %v3330_v1 }
0x180f   :  { %v3332_v8 = vpop.permute.xlu0 %1920 }
0x1810   :  { %vm1939_vm9 = vcmp.eq.s32.totalorder %v2820_v26, %v3332_v8 }
0x1811   :  { %v2590_v58 = vpop.eup %2589 }
0x1812   :  { %2448 = vmatmul.mubr.msk.f32.vlgmr.msra.gmra.mxu1 %vm1182_vm10, %v2590_v58 }
0x1813   :  { %v1924_v13 = vpop.permute.xlu0 %1923  ;;  %2479 = vmatpush3.msra.mxu1 %v3152_v50  ;;  %2466 = vmatprep.mubr.msk.f32.mxu1 %vm2633_vm12, %v2631_v30 }
0x1814   :  { %vm1940_vm2 = vcmp.eq.s32.totalorder %v2820_v26, %v1924_v13 }
0x1815   :  { %v3340_v9 = vsel %vm1940_vm2, 1.0, %v2631_v30 }
0x1816   :  { %2467 = vmatmul.mubr.msk.f32.vlgmr.msra.gmra.mxu1 %vm1182_vm10, %v3340_v9 }
0x1817   :  { %v1927_v15 = vpop.permute.xlu0 %1926  ;;  %2469 = vmatprep.mubr.msk.f32.mxu1 %vm2633_vm12, %v2631_v30 }
0x1818   :  { %vm1941_vm3 = vcmp.eq.s32.totalorder %v2820_v26, %v1927_v15 }
0x1819   :  { %v3348_v63 = vsel %vm1941_vm3, 1.0, %v2631_v30 }
0x181a   :  { %2470 = vmatmul.mubr.msk.f32.gmra.mxu1 %vm1182_vm10, %v3348_v63  ;;  %v1965_v47 = vmul.f32 %v3348_v63, %v3278_v3 }
0x181b   :  { %2472 = vmatprep.mubr.msk.f32.mxu1 %vm2633_vm12, %v2631_v30  ;;  %v1933_v58 = vpop.permute.xlu0 %1932 }
0x181c   :  { %v1980_v60 = vsel %vm1182_vm10, %v1965_v47, 0.0  ;;  %vm1943_vm6 = vcmp.eq.s32.totalorder %v2820_v26, %v1933_v58 }
0x181d   :  { %v3409_v62 = vsel %vm1943_vm6, 1.0, %v2631_v30 }
0x18d2   :  { %v1765_v18 = vpop.f32.mrf.mxu1 }
0x18d3   :  { %2591 = vlog2.f32 %v1765_v18 }
0x18d4   :  { %v2449_v38 = vpop.f32.mrf.mxu1 }
0x18d6   :  { %v3354_v32 = vpop.f32.mrf.mxu1 }
0x18d8   :  { %v2468_v2 = vpop.f32.mrf.mxu1 }
0x18da   :  { %v3356_v25 = vpop.f32.mrf.mxu1 }
0x18dc   :  { %v2471_v22 = vpop.f32.mrf.mxu1 }
0x18e0   :  { %v2592_v23 = vpop.eup %2591 }
0x18e1   :  { %v1770_v31 = vmul.f32 0.6931472, %v2592_v23  ;;  %v1967_v23 = vmul.f32 %v3409_v62, %v1177_v57 }
0x18e3   :  { %v1771_v10 = vadd.f32 %v1770_v31, %v1692_v56  ;;  %v1968_v56 = vsel %vm1182_vm10, %v1961_v11, 0.0  ;;  %v1986_v31 = vsel %vm1182_vm10, %v1967_v23, 0.0  ;;  %v1875_v11 = vpop.permute.xlu0 %1874 }
0x18e5   :  { %v1772_v4 = vadd.f32 %v1771_v10, %v3159_v35 }
0x18e7   :  { %v1773_v0 = vadd.f32 %v1772_v4, %v1177_v57  ;;  %v3436_v57 = vsel %vm1938_vm8, 1.0, %v2631_v30 }
0x18e9   :  { %v1779_v16 = vmul.f32 %v1777_v36, %v1773_v0  ;;  %v3442_v0 = vsel %vm1939_vm9, 1.0, %v2631_v30 }
0x18eb   :  { %v3362_v29 = vadd.f32 %v1786_v51, %v1779_v16 }
0x18ed   :  { %v1788_v17 = vsel %vm1182_vm10, %v3362_v29, -inf }
0x18ee   :  { %1789 = vmax.xlane.f32.xlu1 %v1788_v17 }
0x18ff   :  { %1929 = vperm.xlu1 %2486, %v1910_v34  }
0x1903   :  { %2149 = vperm.xlu1 %2486, %v2146_v33  }
0x1907   :  { %2161 = vperm.xlu1 %2486, %v2158_v48  }
0x190b   :  { %2173 = vperm.xlu1 %2486, %v2170_v21  }
0x190f   :  { %2185 = vperm.xlu1 %2486, %v2182_v39  }
0x1913   :  { %2197 = vperm.xlu1 %2486, %v2194_v28  }
0x1917   :  { %1935 = vperm.xlu1 %2486, %v1912_v6   ;;  %v1161_v6 = vadd.f32 %v3229_v5, %v3194_v20 }
0x191b   :  { %2209 = vperm.xlu1 %2486, %v2206_v49  }
0x191f   :  { %2221 = vperm.xlu1 %2486, %v2218_v41  }
0x1943   :  { %1969 = vadd.xlane.f32.xlu1 %v1968_v56 }
0x1947   :  { %1981 = vadd.xlane.f32.xlu1 %v1980_v60  ;;  %v1178_v60 = vadd.f32 %v3139_v45, %v1161_v6 }
0x1977   :  { %v3402_v13 = vpop.xlane.xlu1 %1789 }
0x1978   :  { %v1791_v27 = vsub.f32 %v3362_v29, %v3402_v13 }
0x197a   :  { %v1792_v15 = vmul.f32 1.442695, %v1791_v27 }
0x197b   :  { %v1930_v18 = vpop.permute.xlu1 %1929 }
0x197c   :  { %2593 = vpow2.f32 %v1792_v15  ;;  %vm1942_vm7 = vcmp.eq.s32.totalorder %v2820_v26, %v1930_v18 }
0x197d   :  { %v3412_v3 = vsel %vm1942_vm7, 1.0, %v2631_v30 }
0x197e   :  { %2473 = vmatmul.mubr.msk.f32.gmra.mxu1 %vm1182_vm10, %v3412_v3  ;;  %v1966_v38 = vmul.f32 %v3412_v3, %v3299_v54 }
0x197f   :  { %v2150_v2 = vpop.permute.xlu1 %2149  ;;  %2475 = vmatprep.mubr.msk.f32.mxu1 %vm2633_vm12, %v2631_v30 }
0x1980   :  { %v1983_v22 = vsel %vm1182_vm10, %v1966_v38, 0.0  ;;  %v2152_v1 = vmul.f32 %v3394_v43, %v2150_v2 }
0x1981   :  { %1984 = vadd.xlane.f32.xlu1 %v1983_v22 }
0x1982   :  { %2476 = vmatmul.mubr.msk.f32.gmra.mxu1 %vm1182_vm10, %v3409_v62 }
0x1983   :  { %v2162_v14 = vpop.permute.xlu1 %2161 }
0x1985   :  { %1987 = vadd.xlane.f32.xlu1 %v1986_v31 }
0x1987   :  { %v2174_v36 = vpop.permute.xlu1 %2173 }
0x1988   :  { %v2176_v42 = vmul.f32 %v3442_v0, %v2174_v36 }
0x1989   :  { %v2594_v10 = vpop.eup %2593 }
0x198a   :  { %2453 = vmatmul.mubr.msk.f32.vlgmr.msra.gmra.mxu0 %vm1182_vm10, %v2594_v10 }
0x198b   :  { %v2186_v54 = vpop.permute.xlu1 %2185  ;;  %2456 = vmatpush3.msra.mxu0 %v3152_v50  ;;  %2457 = vmatprep.mubr.msk.f32.mxu0 %vm2633_vm12, %v2631_v30  ;;  %v2164_v50 = vmul.f32 %v3436_v57, %v2162_v14 }
0x198c   :  { %v2188_v51 = vmul.f32 %v3340_v9, %v2186_v54 }
0x198d   :  { %v2165_v16 = vadd.f32 %v2164_v50, %v2152_v1  ;;  %v1882_v1 = vpop.permute.xlu0 %1881 }
0x198e   :  { %2458 = vmatmul.mubr.msk.f32.vlgmr.msra.gmra.mxu0 %vm1182_vm10, %v3394_v43 }
0x198f   :  { %v2198_v4 = vpop.permute.xlu1 %2197  ;;  %2460 = vmatprep.mubr.msk.f32.mxu0 %vm2633_vm12, %v2631_v30  ;;  %v2177_v17 = vadd.f32 %v2176_v42, %v2165_v16 }
0x1990   :  { %v2200_v19 = vmul.f32 %v3348_v63, %v2198_v4 }
0x1991   :  { %v2189_v33 = vadd.f32 %v2188_v51, %v2177_v17  ;;  %v2334_v51 = vld [vmem:[%s3538_s9] ss:$0 sm:$0xff]  ;;  %s2634_s9 = smov [#allocation2]  }
0x1992   :  { %2461 = vmatmul.mubr.msk.f32.gmra.mxu0 %vm1182_vm10, %v3436_v57  ;;  %s2258_s23 = sshll.u32 %s2634_s9, 4  ;;  %s2259_s23 = int_to_ptr.vmem [resolvable:$true] %s2258_s23 }
0x1993   :  { %v1936_v8 = vpop.permute.xlu1 %1935  ;;  %2463 = vmatprep.mubr.msk.f32.mxu0 %vm2633_vm12, %v2631_v30  ;;  %v2201_v21 = vadd.f32 %v2200_v19, %v2189_v33  ;;  %vm2250_vm12 = vcmask 0   ;;  %s2608_s24 = scalar_lea.vmem %s2259_s23, 16  ;;  %s2612_s12 = scalar_lea.vmem %s2259_s23, 32 }
0x1994   :  { %vm1944_vm11 = vcmp.eq.s32.totalorder %v2820_v26, %v1936_v8  ;;  %v1884_v8 = vmul.f32 %v1882_v1, %v3362_v29  ;;  %p2609_p0 = scmp.ne.s32.totalorder %s2259_s23, %s2608_s24  ;;  %p2613_p1 = scmp.lt.s32.totalorder %s2259_s23, %s2259_s23 }
0x1995   :  { %v3457_v39 = vsel %vm1944_vm11, 1.0, %v2631_v30  ;;  %p2614_p2 = scmp.lt.s32.totalorder %s2612_s12, %s2608_s24 }
0x1996   :  { %2464 = vmatmul.mubr.msk.f32.gmra.mxu0 %vm1182_vm10, %v3442_v0  ;;  %v2226_v56 = vmul.f32 %v3457_v39, %v1875_v11 }
0x1997   :  { %v2210_v34 = vpop.permute.xlu1 %2209  ;;  %p2615_p3 = por %p2614_p2, %p2613_p1 }
0x1998   :  { %v2212_v48 = vmul.f32 %v3412_v3, %v2210_v34 }
0x1999   :  { %p2616_p4 = pnand %p2615_p3, %p2609_p0 }
0x199a   :  { %v2213_v49 = vadd.f32 %v2212_v48, %v2201_v21  ;;  %v1962_v21 = vmul.f32 %v3436_v57, %v3201_v46 }
0x199b   :  { %v2222_v28 = vpop.permute.xlu1 %2221 }
0x199c   :  { %v2224_v41 = vmul.f32 %v3409_v62, %v2222_v28  ;;  %v1971_v6 = vsel %vm1182_vm10, %v1962_v21, 0.0 }
0x199e   :  { %v2225_v47 = vadd.f32 %v2224_v41, %v2213_v49 }
0x19a0   :  { %v3464_v26 = vadd.f32 %v2226_v56, %v2225_v47  ;;  %v2114_v56 = vmul.f32 %v3412_v3, %v3356_v25 }
0x19a2   :  { %v2233_v58 = vmul.f32 %v3464_v26, %v1178_v60 }
0x19a4   :  { %v2234_v30 = vsel %vm1182_vm10, %v2233_v58, 0.0  ;;  %v2228_v58 = vmul.f32 %v2334_v51, %v3464_v26 }
0x19a5   :  { %2235 = vadd.xlane.f32.xlu1 %v2234_v30 }
0x19a6   :  { %v2229_v30 = vsel %vm1182_vm10, %v2228_v58, 0.0 }
0x1a3e   :  { %v2101_v27 = vpop.f32.mrf.mxu1 }
0x1a40   :  { %v2474_v15 = vpop.f32.mrf.mxu1 }
0x1a42   :  { %v2106_v18 = vpop.f32.mrf.mxu1 }
0x1a44   :  { %v2477_v20 = vpop.f32.mrf.mxu1 }
0x1a4a   :  { %v1863_v5 = vpop.f32.mrf.mxu0 }
0x1a4b   :  { %2595 = vlog2.f32 %v1863_v5 }
0x1a4c   :  { %v2454_v38 = vpop.f32.mrf.mxu0 }
0x1a4e   :  { %v2076_v2 = vpop.f32.mrf.mxu0 }
0x1a4f   :  { %v2110_v19 = vmul.f32 %v3436_v57, %v2076_v2  ;;  %v1964_v57 = vmul.f32 %v3340_v9, %v3256_v37 }
0x1a50   :  { %v2459_v22 = vpop.f32.mrf.mxu0 }
0x1a52   :  { %v2081_v23 = vpop.f32.mrf.mxu0 }
0x1a53   :  { %v2111_v33 = vmul.f32 %v3442_v0, %v2081_v23 }
0x1a54   :  { %v2462_v14 = vpop.f32.mrf.mxu0 }
0x1a55   :  { %v2120_v48 = vsel %vm1182_vm10, %v2111_v33, 0.0 }
0x1a56   :  { %v2086_v31 = vpop.f32.mrf.mxu0 }
0x1a57   :  { %v2112_v28 = vmul.f32 %v3340_v9, %v2086_v31  ;;  %v2116_v9 = vmul.f32 %v3457_v39, %v2106_v18  ;;  %v1970_v39 = vpop.xlane.xlu1 %1969 }
0x1a58   :  { %v2596_v45 = vpop.eup %2595  ;;  %v2465_v36 = vpop.f32.mrf.mxu0  ;;  %v2144_v23 = vmul.f32 %v3370_v55, %v1970_v39 }
0x1a59   :  { %v1868_v10 = vmul.f32 0.6931472, %v2596_v45  ;;  %v2123_v49 = vsel %vm1182_vm10, %v2112_v28, 0.0  ;;  %v2135_v3 = vsel %vm1182_vm10, %v2116_v9, 0.0 }
0x1a5b   :  { %v1869_v54 = vadd.f32 %v1868_v10, %v3402_v13  ;;  %v2117_v13 = vsel %vm1182_vm10, %v2110_v19, 0.0  ;;  %v1982_v19 = vpop.xlane.xlu1 %1981 }
0x1a5c   :  { %v2192_v33 = vmul.f32 %v3245_v40, %v1982_v19 }
0x1a5d   :  { %v1870_v4 = vadd.f32 %v1869_v54, %v3159_v35  ;;  %v2138_v35 = vmul.f32 %v3394_v43, %v3144_v59  ;;  %v1963_v59 = vmul.f32 %v3442_v0, %v3236_v7  ;;  %v2113_v43 = vmul.f32 %v3348_v63, %v3354_v32 }
0x1a5e   :  { %v2129_v7 = vsel %vm1182_vm10, %v2114_v56, 0.0 }
0x1a5f   :  { %v1871_v50 = vadd.f32 %v1870_v4, %v1178_v60  ;;  %v2139_v29 = vsel %vm1182_vm10, %v2138_v35, 0.0  ;;  %v1974_v41 = vsel %vm1182_vm10, %v1963_v59, 0.0  ;;  %v2126_v46 = vsel %vm1182_vm10, %v2113_v43, 0.0  ;;  %v1985_v35 = vpop.xlane.xlu1 %1984 }
0x1a60   :  { %v2115_v60 = vmul.f32 %v3409_v62, %v2101_v27  ;;  %v2204_v21 = vmul.f32 %v3266_v24, %v1985_v35 }
0x1a61   :  { %v1877_v42 = vmul.f32 %v1875_v11, %v1871_v50  ;;  %v1977_v11 = vsel %vm1182_vm10, %v1964_v57, 0.0 }
0x1a62   :  { %v2132_v25 = vsel %vm1182_vm10, %v2115_v60, 0.0 }
0x1a63   :  { %v1885_v16 = vadd.f32 %v1884_v8, %v1877_v42 }
0x1a65   :  { %v1892_v17 = vadd.f32 %v2334_v51, %v1885_v16 }
0x1a67   :  { %v1893_v34 = vsel %vm1182_vm10, %v1892_v17, -inf }
0x1a68   :  { %1894 = vmax.xlane.f32.xlu0 %v1893_v34 }
0x1a6c   :  { %2118 = vadd.xlane.f32.xlu0 %v2117_v13 }
0x1a70   :  { %2140 = vadd.xlane.f32.xlu0 %v2139_v29 }
0x1a74   :  { %2121 = vadd.xlane.f32.xlu0 %v2120_v48 }
0x1a78   :  { %1972 = vadd.xlane.f32.xlu0 %v1971_v6  ;;  %v1988_v6 = vpop.xlane.xlu1 %1987 }
0x1a79   :  { %v2216_v43 = vmul.f32 %v3287_v44, %v1988_v6 }
0x1a7c   :  { %2124 = vadd.xlane.f32.xlu0 %v2123_v49 }
0x1a80   :  { %1975 = vadd.xlane.f32.xlu0 %v1974_v41 }
0x1a84   :  { %2127 = vadd.xlane.f32.xlu0 %v2126_v46  ;;  %v2236_v46 = vpop.xlane.xlu1 %2235 }
0x1a88   :  { %1978 = vadd.xlane.f32.xlu0 %v1977_v11 }
0x1a8c   :  { %2130 = vadd.xlane.f32.xlu0 %v2129_v7 }
0x1af1   :  { %v3499_v0 = vpop.xlane.xlu0 %1894 }
0x1af2   :  { %v1896_v63 = vsub.f32 %v1892_v17, %v3499_v0 }
0x1af4   :  { %v1897_v32 = vmul.f32 1.442695, %v1896_v63 }
0x1af5   :  { %v2119_v15 = vpop.xlane.xlu0 %2118 }
0x1af6   :  { %2597 = vpow2.f32 %v1897_v32  ;;  %v2142_v2 = vmul.f32 %v3101_v53, %v2119_v15 }
0x1af9   :  { %v2141_v20 = vpop.xlane.xlu0 %2140 }
0x1afa   :  { %v2143_v22 = vadd.f32 %v2142_v2, %v2141_v20 }
0x1afc   :  { %v2145_v26 = vadd.f32 %v2144_v23, %v2143_v22 }
0x1afd   :  { %v2122_v5 = vpop.xlane.xlu0 %2121 }
0x1afe   :  { %v2154_v14 = vmul.f32 %v3170_v12, %v2122_v5 }
0x1b00   :  { %v2155_v36 = vadd.f32 %v2154_v14, %v2145_v26 }
0x1b01   :  { %v1973_v62 = vpop.xlane.xlu0 %1972 }
0x1b02   :  { %v2156_v31 = vmul.f32 %v3101_v53, %v1973_v62 }
0x1b03   :  { %v2598_v47 = vpop.eup %2597 }
0x1b04   :  { %v1899_v37 = vsel %vm1182_vm10, %v2598_v47, 0.0  ;;  %v2157_v54 = vadd.f32 %v2156_v31, %v2155_v36  ;;  %vm2241_vm10 = vcmask 7168  }
0x1b05   :  { %1900 = vadd.xlane.f32.xlu0 %v1899_v37  ;;  %v2125_v27 = vpop.xlane.xlu0 %2124 }
0x1b06   :  { %v2166_v10 = vmul.f32 %v3213_v52, %v2125_v27 }
0x1b08   :  { %v2167_v50 = vadd.f32 %v2166_v10, %v2157_v54 }
0x1b09   :  { %2133 = vadd.xlane.f32.xlu0 %v2132_v25  ;;  %v1976_v38 = vpop.xlane.xlu0 %1975 }
0x1b0a   :  { %v2168_v4 = vmul.f32 %v3170_v12, %v1976_v38 }
0x1b0c   :  { %v2169_v8 = vadd.f32 %v2168_v4, %v2167_v50 }
0x1b0d   :  { %2136 = vadd.xlane.f32.xlu0 %v2135_v3  ;;  %v2128_v18 = vpop.xlane.xlu0 %2127 }
0x1b0e   :  { %v2178_v1 = vmul.f32 %v3245_v40, %v2128_v18  ;;  %v2237_v40 = vmul.f32 %v3326_v61, %v2236_v46 }
0x1b10   :  { %v2179_v51 = vadd.f32 %v2178_v1, %v2169_v8 }
0x1b11   :  { %2230 = vadd.xlane.f32.xlu0 %v2229_v30  ;;  %v1979_v45 = vpop.xlane.xlu0 %1978 }
0x1b12   :  { %v2180_v16 = vmul.f32 %v3213_v52, %v1979_v45 }
0x1b14   :  { %v2181_v34 = vadd.f32 %v2180_v16, %v2179_v51 }
0x1b15   :  { %v2131_v42 = vpop.xlane.xlu0 %2130 }
0x1b16   :  { %v2190_v17 = vmul.f32 %v3266_v24, %v2131_v42 }
0x1b18   :  { %v2191_v13 = vadd.f32 %v2190_v17, %v2181_v34 }
0x1b1a   :  { %v2193_v12 = vadd.f32 %v2192_v33, %v2191_v13 }
0x1b8e   :  { %v1901_v53 = vpop.xlane.xlu0 %1900 }
0x1b8f   :  { %2599 = vlog2.f32 %v1901_v53 }
0x1b92   :  { %v2134_v29 = vpop.xlane.xlu0 %2133 }
0x1b93   :  { %v2202_v48 = vmul.f32 %v3287_v44, %v2134_v29 }
0x1b95   :  { %v2203_v28 = vadd.f32 %v2202_v48, %v2193_v12 }
0x1b96   :  { %v2137_v52 = vpop.xlane.xlu0 %2136 }
0x1b97   :  { %v2205_v49 = vadd.f32 %v2204_v21, %v2203_v28  ;;  %v2214_v59 = vmul.f32 %v3326_v61, %v2137_v52 }
0x1b99   :  { %v2215_v41 = vadd.f32 %v2214_v59, %v2205_v49 }
0x1b9a   :  { %v2231_v56 = vpop.xlane.xlu0 %2230 }
0x1b9b   :  { %v2217_v57 = vadd.f32 %v2216_v43, %v2215_v41 }
0x1b9c   :  { %v2600_v11 = vpop.eup %2599 }
0x1b9d   :  { %v1903_v7 = vmul.f32 0.6931472, %v2600_v11  ;;  %v2232_v63 = vadd.f32 %v2231_v56, %v2217_v57 }
0x1b9f   :  { %v1904_v32 = vadd.f32 %v1903_v7, %v3499_v0  ;;  %v2238_v24 = vadd.f32 %v2237_v40, %v2232_v63 }
0x1ba1   :  { %v2239_v47 = vsub.f32 %v2238_v24, %v1904_v32 }
0x1ba3   :  { %v2240_v60 = vmul.f32 %v3370_v55, %v2239_v47 }
0x1ba5   :  { %v2242_v37 = vsel %vm2241_vm10, %v2240_v60, 0.0 }
0x1ba6   :  { %v2243_v9 = vrot.slane %v2242_v37, 4 }
0x1ba8   :  { %v2244_v25 = vadd.f32 %v2243_v9, %v2242_v37 }
0x1baa   :  { %v2245_v44 = vrot.slane %v2244_v25, 2 }
0x1bac   :  { %v2246_v3 = vadd.f32 %v2245_v44, %v2244_v25 }
0x1bae   :  { %v2247_v58 = vrot.slane %v2246_v3, 1 }
0x1bb0   :  { %v2248_v30 = vadd.f32 %v2247_v58, %v2246_v3 }
0x1bb2   :  { %v2249_v61 = vsub.f32 0.0, %v2248_v30 }
0x1bb4   :  { %2251 = vst.msk [vmem:[#allocation2] sm:$0x1] %vm2250_vm12, %v2249_v61 }
0x1bb5   :  { %2619 = shalt.err (!%p2616_p4)
}
0x1bb6   :  { %2261 = dma.vmem_to_hbm [thread:$0]  %s2259_s23, 16, %s3542_s13, [#allocation3]  }
0x1bb7   :  { %2628 = dma.done.wait [#allocation3], 16  }
0x1bb8   :  { %2629 = vsyncadd [#allocation3], 4294967280 }
0x1bb9   :  { %2265 = vsyncpa [#allocation3], 1 }

</bundles_post_ra>
